<compile_context>
chip_gen: v5e
topology: v5e:2x2
jax: 0.10.0
libtpu: 0.0.40
codegen_flags: <defaults>
</compile_context>

<pallas_src>
import jax
import jax.numpy as jnp
import numpy as np
from jax import lax
from jax.experimental import pallas as pl
from jax.experimental.pallas import tpu as pltpu

EPS = 1e-5

# Parity-plane tap table for ConvTranspose2d(k=4, s=2, p=1):
#   out[2j+py, 2i+px, c] = sum_{(ky,dy) in TAPS[py], (kx,dx) in TAPS[px]}
#                              w[ky, kx, c] * y[j+dy, i+dx, c]   (y zero-padded)
_TAPS = {0: ((1, 0), (3, -1)), 1: ((0, 1), (2, 0))}


def _fused_deconv_kernel(x_ref, xb_ref, xt_ref, w1_ref, b1_ref, wt_ref,
                         w2_ref, b23_ref, o_ref):
    """Fused 1x1+BN+ReLU6 -> dw ConvTranspose(4,2,1)+BN -> 1x1+BN+ReLU6.

    x_ref  : (1, th*W, Cin)    main input rows of this tile (row-major pixels)
    xb_ref : (1, 1, W, Cin)    halo image row r*th - 1   (clamped; masked if OOB)
    xt_ref : (1, 1, W, Cin)    halo image row (r+1)*th   (clamped; masked if OOB)
    w1_ref : (Cin, Cout)       1x1 conv #1, BN1 scale folded in
    b1_ref : (1, Cout)         BN1 bias
    wt_ref : (16, Cout)        4x4 dw weights (ky*4+kx, c), BN2 scale folded in
    w2_ref : (Cout, Cout)      1x1 conv #2, BN3 scale folded in
    b23_ref: (1, Cout)         BN2 bias pushed through conv #2, plus BN3 bias
    o_ref  : (1, th*W, 4*Cout) lane-packed output: plane (py,px) sits at lanes
                               [(2*py+px)*Cout : (2*py+px+1)*Cout]
    """
    f32 = jnp.float32
    r = pl.program_id(1)
    nr = pl.num_programs(1)

    thw = x_ref.shape[1]
    w = xb_ref.shape[2]
    cout = w1_ref.shape[1]

    w1 = w1_ref[...].astype(f32)
    b1 = b1_ref[...].astype(f32)

    def stage1(x2d):  # 1x1 conv + BN1 + ReLU6
        y = jnp.dot(x2d.astype(f32), w1, preferred_element_type=f32) + b1
        return jnp.clip(y, 0.0, 6.0)

    y_main = stage1(x_ref[0])                          # (th*W, Cout)
    y_bot = stage1(xb_ref[0, 0])                       # (W, Cout)
    y_top = stage1(xt_ref[0, 0])                       # (W, Cout)
    # The transposed conv zero-pads its *input* (the stage-1 output); halo rows
    # that fall outside the image must contribute zero.
    y_bot = jnp.where(r > 0, y_bot, 0.0)
    y_top = jnp.where(r < nr - 1, y_top, 0.0)
    # Stage-1 output for image rows [r*th - 1, (r+1)*th], flattened row-major.
    ybuf = jnp.concatenate([y_bot, y_main, y_top], axis=0)   # ((th+2)*W, Cout)

    # Column (W-axis) shifts of the flattened buffer.  A +-1 flat-row shift is a
    # +-1 image-column shift except at the W edges, which must be zero (those
    # entries crossed into a neighbouring image row).
    q = ybuf.shape[0]
    zrow = jnp.zeros((1, cout), f32)
    col = lax.broadcasted_iota(jnp.int32, (q, 1), 0) % w
    y_px1 = jnp.where(col != w - 1,
                      jnp.concatenate([ybuf[1:], zrow], axis=0), 0.0)
    y_mx1 = jnp.where(col != 0,
                      jnp.concatenate([zrow, ybuf[:-1]], axis=0), 0.0)
    shift_x = {0: ybuf, 1: y_px1, -1: y_mx1}

    # The 9 (dy, dx)-shifted windows over this tile's th*W pixels; each is
    # shared by every parity plane that uses that tap.
    win = {}
    for dx in (-1, 0, 1):
        sx = shift_x[dx]
        for dy in (-1, 0, 1):
            start = (1 + dy) * w
            win[(dy, dx)] = sx[start:start + thw]            # (th*W, Cout)

    wk = wt_ref[...].astype(f32)                             # (16, Cout)
    w2 = w2_ref[...].astype(f32)
    b23 = b23_ref[...].astype(f32)

    for py in (0, 1):
        for px in (0, 1):
            acc = None
            for ky, dy in _TAPS[py]:
                for kx, dx in _TAPS[px]:
                    term = wk[ky * 4 + kx] * win[(dy, dx)]
                    acc = term if acc is None else acc + term
            # stage 3: 1x1 conv + (folded) BN + ReLU6
            o = jnp.dot(acc, w2, preferred_element_type=f32) + b23
            o = jnp.clip(o, 0.0, 6.0)
            k = 2 * py + px
            o_ref[0, :, k * cout:(k + 1) * cout] = o.astype(o_ref.dtype)


# ----------------------------- parameters / wrapper --------------------------
def bn_fold(gamma, beta, mean, var, eps=EPS):
    scale = gamma / jnp.sqrt(var + eps)
    bias = beta - mean * scale
    return scale, bias


def _pick_row_tile(h, w, cout, budget_bytes=8 * 1024 * 1024):
    """Largest multiple-of-8 divisor of H whose in-kernel footprint fits."""
    lanes = max(cout, 128)
    per_row = 20 * w * lanes * 4             # rough f32 bytes of live temporaries
    cap = max(1, budget_bytes // per_row)
    if h <= cap:
        return h
    best = None
    for th in range(8, h + 1, 8):
        if h % th == 0 and th <= cap:
            best = th
    # TODO(synk): ragged tail tiles for H with no suitable multiple-of-8 divisor
    # (currently falls back to whole-image rows, which may exceed the budget).
    return best if best is not None else h


def deconv_forward(x_nchw, p, *, row_tile=None):
    b, cin, h, w = x_nchw.shape
    cout = p["w1"].shape[0]

    s1, bb1 = bn_fold(p["g1"], p["b1"], p["m1"], p["v1"])
    s2, bb2 = bn_fold(p["g2"], p["b2"], p["m2"], p["v2"])
    s3, bb3 = bn_fold(p["g3"], p["b3"], p["m3"], p["v3"])

    # Fold the BN scales into the conv weights; push the dw-stage bias through
    # the final 1x1 conv so stage 2 needs no scale/bias at all.
    w1f = p["w1"][:, :, 0, 0].T * s1[None, :]                     # (Cin, Cout)
    b1f = bb1[None, :]                                            # (1, Cout)
    wtf = (jnp.transpose(p["wt"][:, 0], (1, 2, 0)) * s2).reshape(16, cout)
    w2f = p["w2"][:, :, 0, 0].T * s3[None, :]                     # (Cout, Cout)
    b23 = bb2[None, :] @ w2f + bb3[None, :]                       # (1, Cout)

    x4 = jnp.transpose(x_nchw, (0, 2, 3, 1))                      # NHWC (halos)
    x3 = x4.reshape(b, h * w, cin)                                # row-major px

    th = row_tile if row_tile is not None else _pick_row_tile(h, w, cout)
    if h % th != 0 or (th % 8 != 0 and th != h):
        th = h                                                    # safe fallback
    nr = h // th
    out_lanes = 4 * cout

    flops = (2 * b * h * w * cin * cout                # stage 1
             + 2 * b * 4 * h * w * cout * 4            # depthwise transpose
             + 2 * b * 4 * h * w * cout * cout)        # stage 3
    bytes_accessed = 4 * (x3.size + b * h * w * out_lanes
                          + w1f.size + wtf.size + w2f.size + 3 * cout)

    out = pl.pallas_call(
        _fused_deconv_kernel,
        out_shape=jax.ShapeDtypeStruct((b, h * w, out_lanes), x_nchw.dtype),
        grid_spec=pltpu.PrefetchScalarGridSpec(
            num_scalar_prefetch=0,
            grid=(b, nr),
            in_specs=[
                # main tile: th image rows, flattened to th*W pixels
                pl.BlockSpec((1, th * w, cin), lambda bi, ri: (bi, ri, 0)),
                # 1-row halos (index clamped in range; masked inside the kernel)
                pl.BlockSpec((1, 1, w, cin),
                             lambda bi, ri: (bi, jnp.maximum(ri * th - 1, 0), 0, 0)),
                pl.BlockSpec((1, 1, w, cin),
                             lambda bi, ri: (bi, jnp.minimum((ri + 1) * th, h - 1), 0, 0)),
                pl.BlockSpec((cin, cout), lambda bi, ri: (0, 0)),
                pl.BlockSpec((1, cout), lambda bi, ri: (0, 0)),
                pl.BlockSpec((16, cout), lambda bi, ri: (0, 0)),
                pl.BlockSpec((cout, cout), lambda bi, ri: (0, 0)),
                pl.BlockSpec((1, cout), lambda bi, ri: (0, 0)),
            ],
            out_specs=pl.BlockSpec((1, th * w, out_lanes),
                                   lambda bi, ri: (bi, ri, 0)),
        ),
        compiler_params=pltpu.CompilerParams(
            dimension_semantics=("parallel", "parallel")),
        cost_estimate=pl.CostEstimate(flops=flops, transcendentals=0,
                                      bytes_accessed=int(bytes_accessed)),
    )(x3, x4, x4, w1f, b1f, wtf, w2f, b23)

    # (B, H*W, 4*Cout) -> (B, H, W, py, px, C) -> NCHW (B, C, 2H, 2W).
    # The reshapes are zero-copy views; the transpose is the one unavoidable
    # layout-conversion pass back to the module's NCHW output.
    out = out.reshape(b, h, w, 2, 2, cout)
    out = jnp.transpose(out, (0, 5, 1, 3, 2, 4))
    return out.reshape(b, cout, 2 * h, 2 * w)


def init_params(key, cin, cout):
    ks = jax.random.split(key, 15)
    f32 = jnp.float32
    p = {
        "w1": 0.2 * jax.random.normal(ks[0], (cout, cin, 1, 1), f32),
        "g1": 1.0 + 0.1 * jax.random.normal(ks[1], (cout,), f32),
        "b1": 0.1 * jax.random.normal(ks[2], (cout,), f32),
        "m1": 0.1 * jax.random.normal(ks[3], (cout,), f32),
        "v1": jnp.abs(jax.random.normal(ks[4], (cout,), f32)) + 0.5,
        "wt": 0.2 * jax.random.normal(ks[5], (cout, 1, 4, 4), f32),
        "g2": 1.0 + 0.1 * jax.random.normal(ks[6], (cout,), f32),
        "b2": 0.1 * jax.random.normal(ks[7], (cout,), f32),
        "m2": 0.1 * jax.random.normal(ks[8], (cout,), f32),
        "v2": jnp.abs(jax.random.normal(ks[9], (cout,), f32)) + 0.5,
        "w2": 0.2 * jax.random.normal(ks[10], (cout, cout, 1, 1), f32),
        "g3": 1.0 + 0.1 * jax.random.normal(ks[11], (cout,), f32),
        "b3": 0.1 * jax.random.normal(ks[12], (cout,), f32),
        "m3": 0.1 * jax.random.normal(ks[13], (cout,), f32),
        "v3": jnp.abs(jax.random.normal(ks[14], (cout,), f32)) + 0.5,
    }
    return p


# ----------------------------- pure-JAX reference ----------------------------
def deconv_reference(x, p):
    s1, bb1 = bn_fold(p["g1"], p["b1"], p["m1"], p["v1"])
    s2, bb2 = bn_fold(p["g2"], p["b2"], p["m2"], p["v2"])
    s3, bb3 = bn_fold(p["g3"], p["b3"], p["m3"], p["v3"])
    dn = ("NCHW", "OIHW", "NCHW")
    y = lax.conv_general_dilated(x, p["w1"], (1, 1), "VALID", dimension_numbers=dn)
    y = jnp.clip(y * s1[None, :, None, None] + bb1[None, :, None, None], 0.0, 6.0)
    c = p["wt"].shape[0]
    # ConvTranspose2d(s=2,p=1,k=4,groups=C) == lhs-dilated conv with flipped kernel
    z = lax.conv_general_dilated(
        y, jnp.flip(p["wt"], axis=(2, 3)), (1, 1), [(2, 2), (2, 2)],
        lhs_dilation=(2, 2), dimension_numbers=dn, feature_group_count=c)
    z = z * s2[None, :, None, None] + bb2[None, :, None, None]
    o = lax.conv_general_dilated(z, p["w2"], (1, 1), "VALID", dimension_numbers=dn)
    o = jnp.clip(o * s3[None, :, None, None] + bb3[None, :, None, None], 0.0, 6.0)
    return o


if __name__ == "__main__":
    key = jax.random.PRNGKey(0)
    kx, kp = jax.random.split(key)
    B, CIN, COUT, H, W = 2, 16, 8, 16, 16
    x = jax.random.normal(kx, (B, CIN, H, W), jnp.float32)
    params = init_params(kp, CIN, COUT)

    # row_tile=8 -> grid (2, 2): exercises the halo path and megacore sharding.
    out = jax.block_until_ready(deconv_forward(x, params, row_tile=8))
    ref = jax.block_until_ready(deconv_reference(x, params))

    assert out.shape == (B, COUT, 2 * H, 2 * W), out.shape
    np.testing.assert_allclose(np.asarray(out), np.asarray(ref),
                               rtol=2e-3, atol=2e-3)
    print("KERNEL_OK")
</pallas_src>

<mosaic_0001>
module attributes {stable_mosaic.version = 11 : i64} {
  func.func @_fused_deconv_kernel(%arg0: i32, %arg1: i32, %arg2: memref<1x128x16xf32, #tpu.memory_space<vmem>>, %arg3: memref<1x1x16x16xf32, #tpu.memory_space<vmem>>, %arg4: memref<1x1x16x16xf32, #tpu.memory_space<vmem>>, %arg5: memref<16x8xf32, #tpu.memory_space<vmem>>, %arg6: memref<1x8xf32, #tpu.memory_space<vmem>>, %arg7: memref<16x8xf32, #tpu.memory_space<vmem>>, %arg8: memref<8x8xf32, #tpu.memory_space<vmem>>, %arg9: memref<1x8xf32, #tpu.memory_space<vmem>>, %arg10: memref<1x128x32xf32, #tpu.memory_space<vmem>>) attributes {dimension_semantics = [#tpu.dimension_semantics<parallel>, #tpu.dimension_semantics<parallel>], iteration_bounds = array<i64: 2, 2>, scalar_prefetch = 0 : i64, scratch_operands = 0 : i64, tpu.core_type = #tpu.core_type<tc>, window_params = [{transform_indices = @transform_0, window_bounds = array<i64: 1, 128, 16>}, {transform_indices = @transform_1, window_bounds = array<i64: 1, 1, 16, 16>}, {transform_indices = @transform_2, window_bounds = array<i64: 1, 1, 16, 16>}, {pipeline_mode = #tpu.pipeline_mode<synchronous>, transform_indices = @transform_3, window_bounds = array<i64: 16, 8>}, {pipeline_mode = #tpu.pipeline_mode<synchronous>, transform_indices = @transform_4, window_bounds = array<i64: 1, 8>}, {pipeline_mode = #tpu.pipeline_mode<synchronous>, transform_indices = @transform_5, window_bounds = array<i64: 16, 8>}, {pipeline_mode = #tpu.pipeline_mode<synchronous>, transform_indices = @transform_6, window_bounds = array<i64: 8, 8>}, {pipeline_mode = #tpu.pipeline_mode<synchronous>, transform_indices = @transform_7, window_bounds = array<i64: 1, 8>}, {transform_indices = @transform_8, window_bounds = array<i64: 1, 128, 32>}]} {
    %c0 = arith.constant 0 : index
    %c0_0 = arith.constant 0 : index
    %0 = vector.load %arg5[%c0, %c0_0] : memref<16x8xf32, #tpu.memory_space<vmem>>, vector<16x8xf32>
    %c0_1 = arith.constant 0 : index
    %c0_2 = arith.constant 0 : index
    %1 = vector.load %arg6[%c0_1, %c0_2] : memref<1x8xf32, #tpu.memory_space<vmem>>, vector<1x8xf32>
    %c0_3 = arith.constant 0 : index
    %c0_4 = arith.constant 0 : index
    %c0_5 = arith.constant 0 : index
    %2 = vector.load %arg2[%c0_3, %c0_4, %c0_5] : memref<1x128x16xf32, #tpu.memory_space<vmem>>, vector<1x128x16xf32>
    %3 = vector.shape_cast %2 : vector<1x128x16xf32> to vector<128x16xf32>
    %cst = arith.constant dense<0.000000e+00> : vector<128x8xf32>
    %4 = tpu.matmul %3, %0, %cst {dimension_numbers = #tpu.dot_dimension_numbers<[1], [0], [0], [1], [0, 0, 1, 1], [], []>} : vector<128x16xf32>, vector<16x8xf32>, vector<128x8xf32> -> vector<128x8xf32>
    %5 = vector.broadcast %1 : vector<1x8xf32> to vector<128x8xf32>
    %6 = arith.addf %4, %5 : vector<128x8xf32>
    %cst_6 = arith.constant 0.000000e+00 : f32
    %cst_7 = arith.constant 6.000000e+00 : f32
    %7 = vector.broadcast %cst_6 : f32 to vector<128x8xf32>
    %8 = arith.maximumf %7, %6 : vector<128x8xf32>
    %9 = vector.broadcast %cst_7 : f32 to vector<128x8xf32>
    %10 = arith.minimumf %9, %8 : vector<128x8xf32>
    %c0_8 = arith.constant 0 : index
    %c0_9 = arith.constant 0 : index
    %c0_10 = arith.constant 0 : index
    %c0_11 = arith.constant 0 : index
    %11 = vector.load %arg3[%c0_8, %c0_9, %c0_10, %c0_11] : memref<1x1x16x16xf32, #tpu.memory_space<vmem>>, vector<1x1x16x16xf32>
    %12 = vector.shape_cast %11 : vector<1x1x16x16xf32> to vector<16x16xf32>
    %cst_12 = arith.constant dense<0.000000e+00> : vector<16x8xf32>
    %13 = tpu.matmul %12, %0, %cst_12 {dimension_numbers = #tpu.dot_dimension_numbers<[1], [0], [0], [1], [0, 0, 1, 1], [], []>} : vector<16x16xf32>, vector<16x8xf32>, vector<16x8xf32> -> vector<16x8xf32>
    %14 = vector.broadcast %1 : vector<1x8xf32> to vector<16x8xf32>
    %15 = arith.addf %13, %14 : vector<16x8xf32>
    %cst_13 = arith.constant 0.000000e+00 : f32
    %cst_14 = arith.constant 6.000000e+00 : f32
    %16 = vector.broadcast %cst_13 : f32 to vector<16x8xf32>
    %17 = arith.maximumf %16, %15 : vector<16x8xf32>
    %18 = vector.broadcast %cst_14 : f32 to vector<16x8xf32>
    %19 = arith.minimumf %18, %17 : vector<16x8xf32>
    %c0_15 = arith.constant 0 : index
    %c0_16 = arith.constant 0 : index
    %c0_17 = arith.constant 0 : index
    %c0_18 = arith.constant 0 : index
    %20 = vector.load %arg4[%c0_15, %c0_16, %c0_17, %c0_18] : memref<1x1x16x16xf32, #tpu.memory_space<vmem>>, vector<1x1x16x16xf32>
    %21 = vector.shape_cast %20 : vector<1x1x16x16xf32> to vector<16x16xf32>
    %cst_19 = arith.constant dense<0.000000e+00> : vector<16x8xf32>
    %22 = tpu.matmul %21, %0, %cst_19 {dimension_numbers = #tpu.dot_dimension_numbers<[1], [0], [0], [1], [0, 0, 1, 1], [], []>} : vector<16x16xf32>, vector<16x8xf32>, vector<16x8xf32> -> vector<16x8xf32>
    %23 = vector.broadcast %1 : vector<1x8xf32> to vector<16x8xf32>
    %24 = arith.addf %22, %23 : vector<16x8xf32>
    %cst_20 = arith.constant 0.000000e+00 : f32
    %cst_21 = arith.constant 6.000000e+00 : f32
    %25 = vector.broadcast %cst_20 : f32 to vector<16x8xf32>
    %26 = arith.maximumf %25, %24 : vector<16x8xf32>
    %27 = vector.broadcast %cst_21 : f32 to vector<16x8xf32>
    %28 = arith.minimumf %27, %26 : vector<16x8xf32>
    %c0_i32 = arith.constant 0 : i32
    %29 = arith.cmpi sgt, %arg1, %c0_i32 : i32
    %cst_22 = arith.constant 0.000000e+00 : f32
    %30 = vector.broadcast %cst_22 : f32 to vector<16x8xf32>
    %31 = arith.select %29, %19, %30 : vector<16x8xf32>
    %c1_i32 = arith.constant 1 : i32
    %32 = arith.cmpi slt, %arg1, %c1_i32 : i32
    %cst_23 = arith.constant 0.000000e+00 : f32
    %33 = vector.broadcast %cst_23 : f32 to vector<16x8xf32>
    %34 = arith.select %32, %28, %33 : vector<16x8xf32>
    %35 = tpu.concatenate %31, %10, %34 in 0 : vector<16x8xf32>, vector<128x8xf32>, vector<16x8xf32> -> vector<160x8xf32>
    %cst_24 = arith.constant 0.000000e+00 : f32
    %36 = vector.broadcast %cst_24 : f32 to vector<1x8xf32>
    %37 = tpu.iota {dimensions = array<i32: 0>} : vector<160x1xi32>
    %c16_i32 = arith.constant 16 : i32
    %c0_i32_25 = arith.constant 0 : i32
    %38 = arith.cmpi eq, %c16_i32, %c0_i32_25 : i32
    %c1_i32_26 = arith.constant 1 : i32
    %39 = arith.select %38, %c1_i32_26, %c16_i32 : i32
    %40 = vector.broadcast %39 : i32 to vector<160x1xi32>
    %41 = arith.remsi %37, %40 : vector<160x1xi32>
    %c0_i32_27 = arith.constant 0 : i32
    %42 = vector.broadcast %c0_i32_27 : i32 to vector<160x1xi32>
    %43 = arith.cmpi ne, %41, %42 : vector<160x1xi32>
    %c0_i32_28 = arith.constant 0 : i32
    %44 = vector.broadcast %c0_i32_28 : i32 to vector<160x1xi32>
    %45 = arith.cmpi slt, %41, %44 : vector<160x1xi32>
    %c0_i32_29 = arith.constant 0 : i32
    %46 = arith.cmpi slt, %39, %c0_i32_29 : i32
    %47 = vector.broadcast %46 : i1 to vector<160x1xi1>
    %48 = vector.broadcast %47 : vector<160x1xi1> to vector<160x1xi1>
    %49 = arith.xori %45, %48 : vector<160x1xi1>
    %50 = arith.andi %49, %43 : vector<160x1xi1>
    %51 = vector.broadcast %39 : i32 to vector<160x1xi32>
    %52 = arith.addi %41, %51 : vector<160x1xi32>
    %53 = arith.select %50, %52, %41 : vector<160x1xi1>, vector<160x1xi32>
    %c15_i32 = arith.constant 15 : i32
    %54 = vector.broadcast %c15_i32 : i32 to vector<160x1xi32>
    %55 = arith.cmpi ne, %53, %54 : vector<160x1xi32>
    %56 = vector.extract_strided_slice %35 {offsets = [1, 0], sizes = [159, 8], strides = [1, 1]} : vector<160x8xf32> to vector<159x8xf32>
    %57 = tpu.concatenate %56, %36 in 0 : vector<159x8xf32>, vector<1x8xf32> -> vector<160x8xf32>
    %cst_30 = arith.constant 0.000000e+00 : f32
    %58 = vector.shape_cast %55 : vector<160x1xi1> to vector<160x1xi1>
    %59 = vector.broadcast %58 : vector<160x1xi1> to vector<160x8xi1>
    %60 = vector.broadcast %cst_30 : f32 to vector<160x8xf32>
    %61 = arith.select %59, %57, %60 : vector<160x8xi1>, vector<160x8xf32>
    %c0_i32_31 = arith.constant 0 : i32
    %62 = vector.broadcast %c0_i32_31 : i32 to vector<160x1xi32>
    %63 = arith.cmpi ne, %53, %62 : vector<160x1xi32>
    %64 = vector.extract_strided_slice %35 {offsets = [0, 0], sizes = [159, 8], strides = [1, 1]} : vector<160x8xf32> to vector<159x8xf32>
    %65 = tpu.concatenate %36, %64 in 0 : vector<1x8xf32>, vector<159x8xf32> -> vector<160x8xf32>
    %cst_32 = arith.constant 0.000000e+00 : f32
    %66 = vector.shape_cast %63 : vector<160x1xi1> to vector<160x1xi1>
    %67 = vector.broadcast %66 : vector<160x1xi1> to vector<160x8xi1>
    %68 = vector.broadcast %cst_32 : f32 to vector<160x8xf32>
    %69 = arith.select %67, %65, %68 : vector<160x8xi1>, vector<160x8xf32>
    %70 = vector.extract_strided_slice %69 {offsets = [0, 0], sizes = [128, 8], strides = [1, 1]} : vector<160x8xf32> to vector<128x8xf32>
    %71 = vector.extract_strided_slice %69 {offsets = [16, 0], sizes = [128, 8], strides = [1, 1]} : vector<160x8xf32> to vector<128x8xf32>
    %72 = vector.extract_strided_slice %69 {offsets = [32, 0], sizes = [128, 8], strides = [1, 1]} : vector<160x8xf32> to vector<128x8xf32>
    %73 = vector.extract_strided_slice %35 {offsets = [0, 0], sizes = [128, 8], strides = [1, 1]} : vector<160x8xf32> to vector<128x8xf32>
    %74 = vector.extract_strided_slice %35 {offsets = [16, 0], sizes = [128, 8], strides = [1, 1]} : vector<160x8xf32> to vector<128x8xf32>
    %75 = vector.extract_strided_slice %35 {offsets = [32, 0], sizes = [128, 8], strides = [1, 1]} : vector<160x8xf32> to vector<128x8xf32>
    %76 = vector.extract_strided_slice %61 {offsets = [0, 0], sizes = [128, 8], strides = [1, 1]} : vector<160x8xf32> to vector<128x8xf32>
    %77 = vector.extract_strided_slice %61 {offsets = [16, 0], sizes = [128, 8], strides = [1, 1]} : vector<160x8xf32> to vector<128x8xf32>
    %78 = vector.extract_strided_slice %61 {offsets = [32, 0], sizes = [128, 8], strides = [1, 1]} : vector<160x8xf32> to vector<128x8xf32>
    %c0_33 = arith.constant 0 : index
    %c0_34 = arith.constant 0 : index
    %79 = vector.load %arg7[%c0_33, %c0_34] : memref<16x8xf32, #tpu.memory_space<vmem>>, vector<16x8xf32>
    %c0_35 = arith.constant 0 : index
    %c0_36 = arith.constant 0 : index
    %80 = vector.load %arg8[%c0_35, %c0_36] : memref<8x8xf32, #tpu.memory_space<vmem>>, vector<8x8xf32>
    %c0_37 = arith.constant 0 : index
    %c0_38 = arith.constant 0 : index
    %81 = vector.load %arg9[%c0_37, %c0_38] : memref<1x8xf32, #tpu.memory_space<vmem>>, vector<1x8xf32>
    %82 = vector.extract_strided_slice %79 {offsets = [5, 0], sizes = [1, 8], strides = [1, 1]} : vector<16x8xf32> to vector<1x8xf32>
    %83 = vector.shape_cast %82 : vector<1x8xf32> to vector<8xf32>
    %84 = vector.shape_cast %83 : vector<8xf32> to vector<1x8xf32>
    %85 = vector.broadcast %84 : vector<1x8xf32> to vector<128x8xf32>
    %86 = arith.mulf %85, %74 : vector<128x8xf32>
    %87 = vector.extract_strided_slice %79 {offsets = [7, 0], sizes = [1, 8], strides = [1, 1]} : vector<16x8xf32> to vector<1x8xf32>
    %88 = vector.shape_cast %87 : vector<1x8xf32> to vector<8xf32>
    %89 = vector.shape_cast %88 : vector<8xf32> to vector<1x8xf32>
    %90 = vector.broadcast %89 : vector<1x8xf32> to vector<128x8xf32>
    %91 = arith.mulf %90, %71 : vector<128x8xf32>
    %92 = arith.addf %86, %91 : vector<128x8xf32>
    %93 = vector.extract_strided_slice %79 {offsets = [13, 0], sizes = [1, 8], strides = [1, 1]} : vector<16x8xf32> to vector<1x8xf32>
    %94 = vector.shape_cast %93 : vector<1x8xf32> to vector<8xf32>
    %95 = vector.shape_cast %94 : vector<8xf32> to vector<1x8xf32>
    %96 = vector.broadcast %95 : vector<1x8xf32> to vector<128x8xf32>
    %97 = arith.mulf %96, %73 : vector<128x8xf32>
    %98 = arith.addf %92, %97 : vector<128x8xf32>
    %99 = vector.extract_strided_slice %79 {offsets = [15, 0], sizes = [1, 8], strides = [1, 1]} : vector<16x8xf32> to vector<1x8xf32>
    %100 = vector.shape_cast %99 : vector<1x8xf32> to vector<8xf32>
    %101 = vector.shape_cast %100 : vector<8xf32> to vector<1x8xf32>
    %102 = vector.broadcast %101 : vector<1x8xf32> to vector<128x8xf32>
    %103 = arith.mulf %102, %70 : vector<128x8xf32>
    %104 = arith.addf %98, %103 : vector<128x8xf32>
    %cst_39 = arith.constant dense<0.000000e+00> : vector<128x8xf32>
    %105 = tpu.matmul %104, %80, %cst_39 {dimension_numbers = #tpu.dot_dimension_numbers<[1], [0], [0], [1], [0, 0, 1, 1], [], []>} : vector<128x8xf32>, vector<8x8xf32>, vector<128x8xf32> -> vector<128x8xf32>
    %106 = vector.broadcast %81 : vector<1x8xf32> to vector<128x8xf32>
    %107 = arith.addf %105, %106 : vector<128x8xf32>
    %cst_40 = arith.constant 0.000000e+00 : f32
    %cst_41 = arith.constant 6.000000e+00 : f32
    %108 = vector.broadcast %cst_40 : f32 to vector<128x8xf32>
    %109 = arith.maximumf %108, %107 : vector<128x8xf32>
    %110 = vector.broadcast %cst_41 : f32 to vector<128x8xf32>
    %111 = arith.minimumf %110, %109 : vector<128x8xf32>
    %c0_42 = arith.constant 0 : index
    %c0_43 = arith.constant 0 : index
    %c0_44 = arith.constant 0 : index
    %112 = vector.load %arg10[%c0_42, %c0_43, %c0_44] : memref<1x128x32xf32, #tpu.memory_space<vmem>>, vector<1x128x8xf32>
    %113 = vector.shape_cast %112 : vector<1x128x8xf32> to vector<128x8xf32>
    %114 = vector.shape_cast %111 : vector<128x8xf32> to vector<1x128x8xf32>
    tpu.vector_store %arg10[%c0_42, %c0_43, %c0_44], %114 {strides = array<i32>} : memref<1x128x32xf32, #tpu.memory_space<vmem>>, vector<1x128x8xf32>,
    %115 = vector.extract_strided_slice %79 {offsets = [4, 0], sizes = [1, 8], strides = [1, 1]} : vector<16x8xf32> to vector<1x8xf32>
    %116 = vector.shape_cast %115 : vector<1x8xf32> to vector<8xf32>
    %117 = vector.shape_cast %116 : vector<8xf32> to vector<1x8xf32>
    %118 = vector.broadcast %117 : vector<1x8xf32> to vector<128x8xf32>
    %119 = arith.mulf %118, %77 : vector<128x8xf32>
    %120 = vector.extract_strided_slice %79 {offsets = [6, 0], sizes = [1, 8], strides = [1, 1]} : vector<16x8xf32> to vector<1x8xf32>
    %121 = vector.shape_cast %120 : vector<1x8xf32> to vector<8xf32>
    %122 = vector.shape_cast %121 : vector<8xf32> to vector<1x8xf32>
    %123 = vector.broadcast %122 : vector<1x8xf32> to vector<128x8xf32>
    %124 = arith.mulf %123, %74 : vector<128x8xf32>
    %125 = arith.addf %119, %124 : vector<128x8xf32>
    %126 = vector.extract_strided_slice %79 {offsets = [12, 0], sizes = [1, 8], strides = [1, 1]} : vector<16x8xf32> to vector<1x8xf32>
    %127 = vector.shape_cast %126 : vector<1x8xf32> to vector<8xf32>
    %128 = vector.shape_cast %127 : vector<8xf32> to vector<1x8xf32>
    %129 = vector.broadcast %128 : vector<1x8xf32> to vector<128x8xf32>
    %130 = arith.mulf %129, %76 : vector<128x8xf32>
    %131 = arith.addf %125, %130 : vector<128x8xf32>
    %132 = vector.extract_strided_slice %79 {offsets = [14, 0], sizes = [1, 8], strides = [1, 1]} : vector<16x8xf32> to vector<1x8xf32>
    %133 = vector.shape_cast %132 : vector<1x8xf32> to vector<8xf32>
    %134 = vector.shape_cast %133 : vector<8xf32> to vector<1x8xf32>
    %135 = vector.broadcast %134 : vector<1x8xf32> to vector<128x8xf32>
    %136 = arith.mulf %135, %73 : vector<128x8xf32>
    %137 = arith.addf %131, %136 : vector<128x8xf32>
    %cst_45 = arith.constant dense<0.000000e+00> : vector<128x8xf32>
    %138 = tpu.matmul %137, %80, %cst_45 {dimension_numbers = #tpu.dot_dimension_numbers<[1], [0], [0], [1], [0, 0, 1, 1], [], []>} : vector<128x8xf32>, vector<8x8xf32>, vector<128x8xf32> -> vector<128x8xf32>
    %139 = vector.broadcast %81 : vector<1x8xf32> to vector<128x8xf32>
    %140 = arith.addf %138, %139 : vector<128x8xf32>
    %cst_46 = arith.constant 0.000000e+00 : f32
    %cst_47 = arith.constant 6.000000e+00 : f32
    %141 = vector.broadcast %cst_46 : f32 to vector<128x8xf32>
    %142 = arith.maximumf %141, %140 : vector<128x8xf32>
    %143 = vector.broadcast %cst_47 : f32 to vector<128x8xf32>
    %144 = arith.minimumf %143, %142 : vector<128x8xf32>
    %c0_48 = arith.constant 0 : index
    %c0_49 = arith.constant 0 : index
    %c8 = arith.constant 8 : index
    %145 = vector.load %arg10[%c0_48, %c0_49, %c8] : memref<1x128x32xf32, #tpu.memory_space<vmem>>, vector<1x128x8xf32>
    %146 = vector.shape_cast %145 : vector<1x128x8xf32> to vector<128x8xf32>
    %147 = vector.shape_cast %144 : vector<128x8xf32> to vector<1x128x8xf32>
    tpu.vector_store %arg10[%c0_48, %c0_49, %c8], %147 {strides = array<i32>} : memref<1x128x32xf32, #tpu.memory_space<vmem>>, vector<1x128x8xf32>,
    %148 = vector.extract_strided_slice %79 {offsets = [1, 0], sizes = [1, 8], strides = [1, 1]} : vector<16x8xf32> to vector<1x8xf32>
    %149 = vector.shape_cast %148 : vector<1x8xf32> to vector<8xf32>
    %150 = vector.shape_cast %149 : vector<8xf32> to vector<1x8xf32>
    %151 = vector.broadcast %150 : vector<1x8xf32> to vector<128x8xf32>
    %152 = arith.mulf %151, %75 : vector<128x8xf32>
    %153 = vector.extract_strided_slice %79 {offsets = [3, 0], sizes = [1, 8], strides = [1, 1]} : vector<16x8xf32> to vector<1x8xf32>
    %154 = vector.shape_cast %153 : vector<1x8xf32> to vector<8xf32>
    %155 = vector.shape_cast %154 : vector<8xf32> to vector<1x8xf32>
    %156 = vector.broadcast %155 : vector<1x8xf32> to vector<128x8xf32>
    %157 = arith.mulf %156, %72 : vector<128x8xf32>
    %158 = arith.addf %152, %157 : vector<128x8xf32>
    %159 = vector.extract_strided_slice %79 {offsets = [9, 0], sizes = [1, 8], strides = [1, 1]} : vector<16x8xf32> to vector<1x8xf32>
    %160 = vector.shape_cast %159 : vector<1x8xf32> to vector<8xf32>
    %161 = vector.shape_cast %160 : vector<8xf32> to vector<1x8xf32>
    %162 = vector.broadcast %161 : vector<1x8xf32> to vector<128x8xf32>
    %163 = arith.mulf %162, %74 : vector<128x8xf32>
    %164 = arith.addf %158, %163 : vector<128x8xf32>
    %165 = vector.extract_strided_slice %79 {offsets = [11, 0], sizes = [1, 8], strides = [1, 1]} : vector<16x8xf32> to vector<1x8xf32>
    %166 = vector.shape_cast %165 : vector<1x8xf32> to vector<8xf32>
    %167 = vector.shape_cast %166 : vector<8xf32> to vector<1x8xf32>
    %168 = vector.broadcast %167 : vector<1x8xf32> to vector<128x8xf32>
    %169 = arith.mulf %168, %71 : vector<128x8xf32>
    %170 = arith.addf %164, %169 : vector<128x8xf32>
    %cst_50 = arith.constant dense<0.000000e+00> : vector<128x8xf32>
    %171 = tpu.matmul %170, %80, %cst_50 {dimension_numbers = #tpu.dot_dimension_numbers<[1], [0], [0], [1], [0, 0, 1, 1], [], []>} : vector<128x8xf32>, vector<8x8xf32>, vector<128x8xf32> -> vector<128x8xf32>
    %172 = vector.broadcast %81 : vector<1x8xf32> to vector<128x8xf32>
    %173 = arith.addf %171, %172 : vector<128x8xf32>
    %cst_51 = arith.constant 0.000000e+00 : f32
    %cst_52 = arith.constant 6.000000e+00 : f32
    %174 = vector.broadcast %cst_51 : f32 to vector<128x8xf32>
    %175 = arith.maximumf %174, %173 : vector<128x8xf32>
    %176 = vector.broadcast %cst_52 : f32 to vector<128x8xf32>
    %177 = arith.minimumf %176, %175 : vector<128x8xf32>
    %c0_53 = arith.constant 0 : index
    %c0_54 = arith.constant 0 : index
    %c16 = arith.constant 16 : index
    %178 = vector.load %arg10[%c0_53, %c0_54, %c16] : memref<1x128x32xf32, #tpu.memory_space<vmem>>, vector<1x128x8xf32>
    %179 = vector.shape_cast %178 : vector<1x128x8xf32> to vector<128x8xf32>
    %180 = vector.shape_cast %177 : vector<128x8xf32> to vector<1x128x8xf32>
    tpu.vector_store %arg10[%c0_53, %c0_54, %c16], %180 {strides = array<i32>} : memref<1x128x32xf32, #tpu.memory_space<vmem>>, vector<1x128x8xf32>,
    %181 = vector.extract_strided_slice %79 {offsets = [0, 0], sizes = [1, 8], strides = [1, 1]} : vector<16x8xf32> to vector<1x8xf32>
    %182 = vector.shape_cast %181 : vector<1x8xf32> to vector<8xf32>
    %183 = vector.shape_cast %182 : vector<8xf32> to vector<1x8xf32>
    %184 = vector.broadcast %183 : vector<1x8xf32> to vector<128x8xf32>
    %185 = arith.mulf %184, %78 : vector<128x8xf32>
    %186 = vector.extract_strided_slice %79 {offsets = [2, 0], sizes = [1, 8], strides = [1, 1]} : vector<16x8xf32> to vector<1x8xf32>
    %187 = vector.shape_cast %186 : vector<1x8xf32> to vector<8xf32>
    %188 = vector.shape_cast %187 : vector<8xf32> to vector<1x8xf32>
    %189 = vector.broadcast %188 : vector<1x8xf32> to vector<128x8xf32>
    %190 = arith.mulf %189, %75 : vector<128x8xf32>
    %191 = arith.addf %185, %190 : vector<128x8xf32>
    %192 = vector.extract_strided_slice %79 {offsets = [8, 0], sizes = [1, 8], strides = [1, 1]} : vector<16x8xf32> to vector<1x8xf32>
    %193 = vector.shape_cast %192 : vector<1x8xf32> to vector<8xf32>
    %194 = vector.shape_cast %193 : vector<8xf32> to vector<1x8xf32>
    %195 = vector.broadcast %194 : vector<1x8xf32> to vector<128x8xf32>
    %196 = arith.mulf %195, %77 : vector<128x8xf32>
    %197 = arith.addf %191, %196 : vector<128x8xf32>
    %198 = vector.extract_strided_slice %79 {offsets = [10, 0], sizes = [1, 8], strides = [1, 1]} : vector<16x8xf32> to vector<1x8xf32>
    %199 = vector.shape_cast %198 : vector<1x8xf32> to vector<8xf32>
    %200 = vector.shape_cast %199 : vector<8xf32> to vector<1x8xf32>
    %201 = vector.broadcast %200 : vector<1x8xf32> to vector<128x8xf32>
    %202 = arith.mulf %201, %74 : vector<128x8xf32>
    %203 = arith.addf %197, %202 : vector<128x8xf32>
    %cst_55 = arith.constant dense<0.000000e+00> : vector<128x8xf32>
    %204 = tpu.matmul %203, %80, %cst_55 {dimension_numbers = #tpu.dot_dimension_numbers<[1], [0], [0], [1], [0, 0, 1, 1], [], []>} : vector<128x8xf32>, vector<8x8xf32>, vector<128x8xf32> -> vector<128x8xf32>
    %205 = vector.broadcast %81 : vector<1x8xf32> to vector<128x8xf32>
    %206 = arith.addf %204, %205 : vector<128x8xf32>
    %cst_56 = arith.constant 0.000000e+00 : f32
    %cst_57 = arith.constant 6.000000e+00 : f32
    %207 = vector.broadcast %cst_56 : f32 to vector<128x8xf32>
    %208 = arith.maximumf %207, %206 : vector<128x8xf32>
    %209 = vector.broadcast %cst_57 : f32 to vector<128x8xf32>
    %210 = arith.minimumf %209, %208 : vector<128x8xf32>
    %c0_58 = arith.constant 0 : index
    %c0_59 = arith.constant 0 : index
    %c24 = arith.constant 24 : index
    %211 = vector.load %arg10[%c0_58, %c0_59, %c24] : memref<1x128x32xf32, #tpu.memory_space<vmem>>, vector<1x128x8xf32>
    %212 = vector.shape_cast %211 : vector<1x128x8xf32> to vector<128x8xf32>
    %213 = vector.shape_cast %210 : vector<128x8xf32> to vector<1x128x8xf32>
    tpu.vector_store %arg10[%c0_58, %c0_59, %c24], %213 {strides = array<i32>} : memref<1x128x32xf32, #tpu.memory_space<vmem>>, vector<1x128x8xf32>,
    return
  }
  func.func @transform_0(%arg0: i32, %arg1: i32) -> (i32, i32, i32) {
    %c0_i32 = arith.constant 0 : i32
    %c0_i32_0 = arith.constant 0 : i32
    return %arg0, %arg1, %c0_i32 : i32, i32, i32
  }
  func.func @transform_1(%arg0: i32, %arg1: i32) -> (i32, i32, i32, i32) {
    %c8_i32 = arith.constant 8 : i32
    %0 = arith.muli %arg1, %c8_i32 : i32
    %c1_i32 = arith.constant 1 : i32
    %1 = arith.subi %0, %c1_i32 : i32
    %c0_i32 = arith.constant 0 : i32
    %2 = arith.maxsi %1, %c0_i32 : i32
    %c0_i32_0 = arith.constant 0 : i32
    %c0_i32_1 = arith.constant 0 : i32
    %c0_i32_2 = arith.constant 0 : i32
    return %arg0, %2, %c0_i32_0, %c0_i32_1 : i32, i32, i32, i32
  }
  func.func @transform_2(%arg0: i32, %arg1: i32) -> (i32, i32, i32, i32) {
    %c1_i32 = arith.constant 1 : i32
    %0 = arith.addi %arg1, %c1_i32 : i32
    %c8_i32 = arith.constant 8 : i32
    %1 = arith.muli %0, %c8_i32 : i32
    %c15_i32 = arith.constant 15 : i32
    %2 = arith.minsi %1, %c15_i32 : i32
    %c0_i32 = arith.constant 0 : i32
    %c0_i32_0 = arith.constant 0 : i32
    %c0_i32_1 = arith.constant 0 : i32
    return %arg0, %2, %c0_i32, %c0_i32_0 : i32, i32, i32, i32
  }
  func.func @transform_3(%arg0: i32, %arg1: i32) -> (i32, i32) {
    %c0_i32 = arith.constant 0 : i32
    %c0_i32_0 = arith.constant 0 : i32
    %c0_i32_1 = arith.constant 0 : i32
    return %c0_i32, %c0_i32_0 : i32, i32
  }
  func.func @transform_4(%arg0: i32, %arg1: i32) -> (i32, i32) {
    %c0_i32 = arith.constant 0 : i32
    %c0_i32_0 = arith.constant 0 : i32
    %c0_i32_1 = arith.constant 0 : i32
    return %c0_i32, %c0_i32_0 : i32, i32
  }
  func.func @transform_5(%arg0: i32, %arg1: i32) -> (i32, i32) {
    %c0_i32 = arith.constant 0 : i32
    %c0_i32_0 = arith.constant 0 : i32
    %c0_i32_1 = arith.constant 0 : i32
    return %c0_i32, %c0_i32_0 : i32, i32
  }
  func.func @transform_6(%arg0: i32, %arg1: i32) -> (i32, i32) {
    %c0_i32 = arith.constant 0 : i32
    %c0_i32_0 = arith.constant 0 : i32
    %c0_i32_1 = arith.constant 0 : i32
    return %c0_i32, %c0_i32_0 : i32, i32
  }
  func.func @transform_7(%arg0: i32, %arg1: i32) -> (i32, i32) {
    %c0_i32 = arith.constant 0 : i32
    %c0_i32_0 = arith.constant 0 : i32
    %c0_i32_1 = arith.constant 0 : i32
    return %c0_i32, %c0_i32_0 : i32, i32
  }
  func.func @transform_8(%arg0: i32, %arg1: i32) -> (i32, i32, i32) {
    %c0_i32 = arith.constant 0 : i32
    %c0_i32_0 = arith.constant 0 : i32
    return %arg0, %arg1, %c0_i32 : i32, i32, i32
  }
}

</mosaic_0001>

<bundles_post_ra>
// kernel: tpu_custom_call.1
= control target key start
LH: loop header
LB: loop body
LE: loop exit
PB: predicated region body
PF: predicated region fallthrough
CT: control target
= control target key end

     0   :  { %s4561_s0 = inlined_call_operand.vmem [shape: f32[2,256,16], index: 0, kind: input, shape index: {}]   ;;  %s4562_s1 = inlined_call_operand.vmem [shape: f32[2,16,16,16], index: 1, kind: input, shape index: {}]   ;;  %s4563_s2 = inlined_call_operand.hbm [shape: f32[2,16,16,16], index: 2, kind: input, shape index: {}]   ;;  %s4564_s3 = inlined_call_operand.vmem [shape: f32[16,8], index: 3, kind: input, shape index: {}]   ;;  %s4565_s4 = inlined_call_operand.vmem [shape: f32[1,8], index: 4, kind: input, shape index: {}]   ;;  %s4566_s5 = inlined_call_operand.vmem [shape: f32[16,8], index: 5, kind: input, shape index: {}]   ;;  %s4567_s6 = inlined_call_operand.vmem [shape: f32[8,8], index: 6, kind: input, shape index: {}]   ;;  %s4568_s7 = inlined_call_operand.vmem [shape: f32[1,8], index: 7, kind: input, shape index: {}]   ;;  %s4569_s8 = inlined_call_operand.vmem [shape: f32[2,256,32], index: 8, kind: output, shape index: {}]  }
   0x1   :  { %4599 = sst [smem:[#allocation25_spill]] %s4569_s8 }
   0x2   :  { %13 = vsyncpa [#allocation3], 0 }
   0x3   :  { %15 = vsyncpa [#allocation3 + $0x1], 0  ;;  %s3091_s27 = smov 0   ;;  %s3093_s28 = smov 0  }
   0x4   :  { %s3095_s29 = smov 0   ;;  %s3097_s30 = smov 0  }
   0x5   :  { %s3099_s9 = smov 0   ;;  %s3101_s10 = smov 0  }
   0x6   :  { %s3103_s11 = smov 0   ;;  %s3105_s12 = smov 0  }
   0x7 LB: > { %4600 = sst [smem:[#allocation5_spill]] %s3031_s10  ;;  %s2730_s13 = sadd.s32 4294967295, %s3039_s12   ;;  %s3039_s12 = sphi %s3105_s12, %s21_s12   ;;  %s3035_s11 = sphi %s3103_s11, %s4686_s11   ;;  %s3031_s10 = sphi %s3101_s10, %s4680_s10   ;;  %s3027_s9 = sphi %s3099_s9, %s4685_s9   ;;  %s3023_s30 = sphi %s3097_s30, %s4679_s30   ;;  %s3019_s29 = sphi %s3095_s29, %s4684_s29   ;;  %s3015_s28 = sphi %s3093_s28, %s4683_s28   ;;  %s3011_s27 = sphi %s3091_s27, %s4682_s27  }
   0x8   : > { %s30_s14 = sadd.s32 1, %s3031_s10  ;;  %s33_s15 = sadd.s32 1, %s3035_s11 }
   0x9   : > { %p31_p0 = scmp.ge.s32.totalorder %s30_s14, 2  ;;  %s2849_s16 = sshll.u32 %s3031_s10, 3 }
   0xa   : > { %s114_s17 = sadd.s32 1, %s3019_s29  ;;  %s2850_s18 = sadd.s32 8, %s2849_s16 }
   0xb   : > { %s4688_s14 = smov (%p31_p0, %s30_s14), 0  ;;  %s4690_s15 = smov (!%p31_p0, %s33_s15), %s3035_s11 }
   0xc   : > { %4601 = sst [smem:[#allocation6_spill]] %s4688_s14  ;;  %s2851_s19 = sshll.u32 %s4688_s14, 3 }
   0xd   : > { %p35_p1 = scmp.ge.s32.totalorder %s4690_s15, 2  ;;  %p103_p2 = scmp.lt.s32.totalorder %s2850_s18, 15 }
   0xe   : > { %s2852_s20 = sadd.s32 8, %s2851_s19  ;;  %p121_p3 = scmp.ne.s32.totalorder %s3019_s29, %s3015_s28 }
   0xf   : > { %s4692_s15 = smov (%p35_p1, %s4690_s15), 0  ;;  %s4694_s18 = smov (!%p103_p2, %s2850_s18), 15 }
  0x10   : > { %4602 = sst [smem:[#allocation7_spill]] %s4692_s15  ;;  %p107_p4 = scmp.lt.s32.totalorder %s2852_s20, 15 }
  0x11   : > { %s109_s21 = ssub.s32 %s3035_s11, %s4692_s15  ;;  %p122_p5 = scmp.eq.s32.totalorder %s3039_s12, 0 }
  0x12   : > { %p127_p6 = scmp.ne.s32.totalorder %s3015_s28, %s3011_s27  ;;  %s4696_s20 = smov (!%p107_p4, %s2852_s20), 15 }
  0x13   : > { %p3149_p7 = por %p122_p5, %p121_p3  ;;  %p128_p8 = scmp.eq.s32.totalorder %s2730_s13, 0 }
  0x14   : > { %s110_s23 = ssub.s32 %s4694_s18, %s4696_s20  ;;  %p2868_p11 = scmp.lt.s32.totalorder %s3039_s12, 4 }
  0x15   : > { %s111_s24 = sor.u32 %s110_s23, %s109_s21  ;;  %p3153_p9 = por %p128_p8, %p127_p6 }
  0x16   : > { %p112_p10 = scmp.eq.s32.totalorder %s111_s24, 0  ;;  %s332_s26 = sand.u32 1, %s3019_s29  }
  0x17   : > { %s2742_s16 = sshll.u32 %s4694_s18, 1  ;;  %s2740_s27 = sshll.u32 %s332_s26, 4 }
  0x18   : > { %s3160_s19 = scalar_select %p112_p10, %s3019_s29, %s114_s17  }
  0x19   : > { %s2743_s15 = sshll.u32 %s3035_s11, 5  ;;  %s336_s10 = scalar_lea.vmem [#allocation2], %s2740_s27 }
  0x1a   : > { %4605 = sst [smem:[#allocation8_spill]] %s3160_s19  ;;  %s345_s14 = sadd.s32 %s2743_s15, %s2742_s16 }
  0x1b   : > { %s350_s13 = sshll.u32 %s336_s10, 4  ;;  %s2744_s20 = sshll.u32 %s345_s14, 3  ;;  %s351_s13 = int_to_ptr.vmem [resolvable:$true] %s350_s13 }
  0x1c   : > { %s347_s8 = scalar_lea.hbm %s4563_s2, %s2744_s20  ;;  %p2865_p12 = pnand %p2868_p11, %p3149_p7 }
  0x1d   : > { %s348_s24 = sshll.u32 %s347_s8, 4  ;;  %p2745_p13 = scmp.ge.s32.totalorder %s3039_s12, 1  ;;  %s349_s24 = int_to_ptr.hbm [resolvable:$true] %s348_s24 }
  0x1e   : > { %s333_s18 = scalar_lea.sflag [#allocation3], %s332_s26  ;;  %s3041_s17 = smov 128  }
  0x1f   : > { %s3042_s19 = smov 8   ;;  %p358_p0 = scmp.lt.s32.totalorder %s3039_s12, 5 }
  0x20   : > { %2867 = dma.hbm_to_vmem [thread:$0]  (!%p2865_p12), %s349_s24, 256, %s351_s13, %s333_s18, %s3041_s17, %s3041_s17, %s3042_s19  }
  0x21   : > { %p359_p1 = pnand %p2745_p13, %p358_p0 }
  0x23   : > { %362 = sbr.rel (%p359_p1) target bundleno = 690 (0x2b2), region = 52 }
  0x28   : > { %s364_s10 = sand.u32 1, %s3015_s28  }
  0x29   : > { %s3171_s14 = sshll.u32 %s364_s10, 4  ;;  %s365_s15 = scalar_lea.sflag [#allocation3], %s364_s10 }
  0x2a   : > { %s368_s16 = scalar_lea.vmem [#allocation2], %s3171_s14 }
  0x2b   : > { %3006 = dma.done.wait (%p3153_p9), %s365_s15, 256  }
  0x2c   : > { %3008 = vsyncadd (%p3153_p9), %s365_s15, 4294967040  ;;  %s2747_s8 = sshll.u32 %s3023_s30, 4  ;;  %p429_p2 = scmp.lt.s32.totalorder %s3027_s9, 1  ;;  %v470_v0 = vld [vmem:[%s4564_s3 + $0x8] sm:$0xff]  ;;  %v469_v1 = vld [vmem:[%s4564_s3] sm:$0xff]  ;;  %vm491_vm0 = vcmask 130048   ;;  %v719_v24 = vlaneseq }
  0x2d   : > { %p431_p3 = scmp.lt.s32.totalorder %s2747_s8, 31  ;;  %s2750_s22 = sshll.u32 %s3023_s30, 3  ;;  %554 = vmatpush.msra.mxu0 %v470_v0  ;;  %2857 = vmatpush.msra.mxu1 %v470_v0  ;;  %v672_v12 = vld [vmem:[%s368_s16] sm:$0xff]  ;;  %v673_v17 = vld [vmem:[%s368_s16 + $0x8] sm:$0xff]  ;;  %vm1161_vm1 = vcmask 1040384   ;;  %vm1020_vm2 = vcmask 1046528  }
  0x2e   : > { %s4698_s9 = smov (!%p429_p2, %s3027_s9), 1  ;;  %s2751_s25 = sadd.s32 4294967295, %s2750_s22  ;;  %2858 = vmatpush.msra.mxu2 %v470_v0  ;;  %v3251_v25 = vld [vmem:[%s4565_s4] ss:$0 sm:$0xff]  ;;  %v3253_v26 = vshrl.u32 %v719_v24, 7  ;;  %v1283_v31 = vld [vmem:[%s4566_s5 + $0x8] sm:$0xff] }
  0x2f   : > { %s4700_s8 = smov (!%p431_p3, %s2747_s8), 31  ;;  %s2748_s26 = sshll.u32 %s4698_s9, 5  ;;  %555 = vmatpush.msra.mxu0 %v469_v1  ;;  %2859 = vmatpush.msra.mxu1 %v469_v1  ;;  %v1282_v33 = vld [vmem:[%s4566_s5] sm:$0xff]  ;;  %v3266_v37 = vperm.slane %v1283_v31, 5  ;;  %v3268_v38 = vperm.slane %v1283_v31, 6  ;;  %v3273_v41 = vperm.slane %v1283_v31, 1 }
  0x30   : > { %s3187_s19 = sadd.s32 %s2748_s26, %s4700_s8  ;;  %p440_p4 = scmp.gt.s32.totalorder %s2751_s25, 0  ;;  %2860 = vmatpush.msra.mxu2 %v469_v1  ;;  %v724_v32 = vadd.s32 32, %v3253_v26  ;;  %v1284_v39 = vld [vmem:[%s4567_s6] sm:$0xff]  ;;  %v3275_v42 = vperm.slane %v1282_v33, 6  ;;  %v723_v43 = vadd.s32 24, %v3253_v26  ;;  %v3282_v44 = vperm.slane %v1283_v31, 4 }
  0x31   : > { %s2749_s27 = sshll.u32 %s3187_s19, 3  ;;  %p2752_p5 = scmp.lt.s32.totalorder %s2751_s25, 15  ;;  %659 = vmatpush.msrb.mxu1 %v470_v0  ;;  %1469 = vmatpush.msrb.mxu0 %v1284_v39  ;;  %v3284_v45 = vperm.slane %v1282_v33, 5  ;;  %v3288_v50 = vperm.slane %v1283_v31, 3  ;;  %v3290_v51 = vperm.slane %v1282_v33, 4  ;;  %v3295_v54 = vperm.slane %v1282_v33, 7 }
  0x32   : > { %s3201_s17 = scalar_lea.vmem %s4561_s0, %s2749_s27  ;;  %s4702_s25 = smov (!%p440_p4, %s2751_s25), 0  ;;  %694 = vmatpush.msrb.mxu2 %v470_v0  ;;  %v772_v40 = vand.u32 15, %v724_v32  ;;  %2861 = vmatpush.msra.mxu3 %v1284_v39  ;;  %v3297_v55 = vperm.slane %v1283_v31, 7  ;;  %v3304_v58 = vperm.slane %v1282_v33, 1  ;;  %v765_v59 = vand.u32 15, %v723_v43 }
  0x33   : > { %v472_v2 = vld [vmem:[%s3201_s17] sm:$0xff]  ;;  %v483_v3 = vld [vmem:[%s3201_s17 + $0x58] sm:$0xff]  ;;  %660 = vmatpush.msrb.mxu1 %v469_v1  ;;  %v473_v4 = vld [vmem:[%s3201_s17 + $0x8] sm:$0xff]  ;;  %s4704_s25 = smov (!%p2752_p5, %s4702_s25), 15  ;;  %p707_p6 = scmp.gt.s32.totalorder %s3023_s30, 0  ;;  %4607 = vst [vmem:[#allocation10_spill] sm:$0xff] %v3288_v50 }
  0x34   : > { %2763 = vmatmul.msk.f32.vlgmr.msra.gmra.mxu0 %vm491_vm0, %v472_v2  ;;  %2774 = vmatmul.msk.f32.vlgmr.msra.gmra.mxu1 %vm491_vm0, %v483_v3  ;;  %v484_v5 = vld [vmem:[%s3201_s17 + $0x60] sm:$0xff]  ;;  %v486_v6 = vld [vmem:[%s3201_s17 + $0x70] sm:$0xff]  ;;  %s2757_s10 = sshll.u32 %s4704_s25, 1  ;;  %v485_v8 = vld [vmem:[%s3201_s17 + $0x68] sm:$0xff]  ;;  %vm3300_vm3 = vcmp.ne.s32.totalorder %v772_v40, 0  ;;  %v722_v62 = vadd.s32 16, %v3253_v26 }
  0x35   : > { %695 = vmatpush.msrb.mxu2 %v469_v1  ;;  %s448_s15 = sadd.s32 %s2757_s10, %s2748_s26  ;;  %v474_v7 = vld [vmem:[%s3201_s17 + $0x10] sm:$0xff]  ;;  %v487_v9 = vld [vmem:[%s3201_s17 + $0x78] sm:$0xff]  ;;  %v476_v13 = vld [vmem:[%s3201_s17 + $0x20] sm:$0xff]  ;;  %1746 = vmatpush.msra.mxu1 %v1284_v39  ;;  %v3308_v63 = vperm.slane %v1282_v33, 3  ;;  %v3314_v2 = vadd.s32 8, %v3253_v26  ;;  %v3316_v3 = vperm.slane %v1282_v33, 2 }
  0x36   : > { %2777 = vmatmul.msk.f32.vlgmr.msra.gmra.mxu2 %vm491_vm0, %v486_v6  ;;  %s2759_s8 = sshll.u32 %s448_s15, 3  ;;  %v475_v10 = vld [vmem:[%s3201_s17 + $0x18] sm:$0xff]  ;;  %v477_v15 = vld [vmem:[%s3201_s17 + $0x28] sm:$0xff]  ;;  %v478_v16 = vld [vmem:[%s3201_s17 + $0x30] sm:$0xff]  ;;  %2430 = vmatpush.msrb.mxu3 %v1284_v39  ;;  %vm3341_vm5 = vcmp.ne.s32.totalorder %v765_v59, 15  ;;  %vm1405_vm10 = vcmask 64512  }
  0x37   : > { %s450_s25 = scalar_lea.vmem %s4562_s1, %s2759_s8  ;;  %v479_v18 = vld [vmem:[%s3201_s17 + $0x38] sm:$0xff]  ;;  %v480_v19 = vld [vmem:[%s3201_s17 + $0x40] sm:$0xff]  ;;  %v481_v20 = vld [vmem:[%s3201_s17 + $0x48] sm:$0xff]  ;;  %2088 = vmatpush.msra.mxu2 %v1284_v39  ;;  %4612 = vst [vmem:[#allocation13_spill] sm:$0xff] %v3316_v3  ;;  %p713_p7 = scmp.lt.s32.totalorder %s3023_s30, 1 }
  0x38   : > { %v637_v11 = vld [vmem:[%s450_s25] sm:$0xff]  ;;  %v638_v14 = vld [vmem:[%s450_s25 + $0x8] sm:$0xff]  ;;  %v482_v21 = vld [vmem:[%s3201_s17 + $0x50] sm:$0xff]  ;;  %s3280_s18 = scalar_select %p707_p6, 1, 0 }
  0x39   : > { %s3602_s17 = scalar_select %p713_p7, 1, 0 }
  0x3a   : > { %v709_v61 = vstv %s3280_s18  ;;  %s4673_s26 = sld [smem:[#allocation25_spill]]  ;;  %s3043_s21 = smov 8  }
  0x3b   : > { %vm3325_vm4 = vcmp.eq.s32.totalorder %v709_v61, 1  ;;  %s3044_s19 = smov 16  }
  0x3c   : > { %2764 = vmatmul.msk.f32.gmra.mxu0 %vm491_vm0, %v473_v4  ;;  %2775 = vmatmul.msk.f32.gmra.mxu1 %vm491_vm0, %v484_v5 }
  0x3e   : > { %2778 = vmatmul.msk.f32.gmra.mxu2 %vm491_vm0, %v487_v9 }
  0x40   : > { %s4193_s20 = scalar_lea.vmem %s4673_s26, %s2749_s27  ;;  %s3045_s27 = smov 24  }
  0x44   : > { %2765 = vmatmul.msk.f32.gmra.mxu0 %vm491_vm0, %v474_v7  ;;  %2776 = vmatmul.msk.f32.gmra.mxu1 %vm491_vm0, %v485_v8  ;;  %v3323_v7 = vadd.s32 48, %v3253_v26 }
  0x46   : > { %2781 = vmatmul.msk.f32.vlgmr.msrb.gmra.mxu2 %vm491_vm0, %v672_v12 }
  0x4c   : > { %2766 = vmatmul.msk.f32.gmra.mxu0 %vm491_vm0, %v475_v10  ;;  %2779 = vmatmul.msk.f32.vlgmr.msrb.gmra.mxu1 %vm491_vm0, %v637_v11 }
  0x4e   : > { %2782 = vmatmul.msk.f32.gmra.mxu2 %vm491_vm0, %v673_v17 }
  0x54   : > { %2767 = vmatmul.msk.f32.gmra.mxu0 %vm491_vm0, %v476_v13  ;;  %2780 = vmatmul.msk.f32.gmra.mxu1 %vm491_vm0, %v638_v14  ;;  %v758_v13 = vand.u32 15, %v722_v62 }
  0x56   : > { %vm3422_vm7 = vcmp.ne.s32.totalorder %v758_v13, 0 }
  0x5c   : > { %2768 = vmatmul.msk.f32.gmra.mxu0 %vm491_vm0, %v477_v15 }
  0x64   : > { %2769 = vmatmul.msk.f32.gmra.mxu0 %vm491_vm0, %v478_v16 }
  0x6c   : > { %2770 = vmatmul.msk.f32.gmra.mxu0 %vm491_vm0, %v479_v18 }
  0x74   : > { %2771 = vmatmul.msk.f32.gmra.mxu0 %vm491_vm0, %v480_v19 }
  0x7c   : > { %2772 = vmatmul.msk.f32.gmra.mxu0 %vm491_vm0, %v481_v20 }
  0x84   : > { %2773 = vmatmul.msk.f32.gmra.mxu0 %vm491_vm0, %v482_v21 }
  0xb1   : > { %v557_v22 = vpop.f32.mrf.mxu0  ;;  %v590_v23 = vpop.f32.mrf.mxu1 }
  0xb2   : > { %v558_v29 = vadd.f32 %v3251_v25, %v557_v22  ;;  %v591_v34 = vadd.f32 %v3251_v25, %v590_v23  ;;  %v751_v23 = vand.u32 15, %v3314_v2 }
  0xb4   : > { %v605_v36 = vmax.f32 %v558_v29, 0.0  ;;  %v616_v46 = vmax.f32 %v591_v34, 0.0  ;;  %v744_v34 = vand.u32 15, %v3253_v26  ;;  %vm3439_vm8 = vcmp.ne.s32.totalorder %v751_v23, 15 }
  0xb6   : > { %v3292_v52 = vmin.f32 %v605_v36, 6.0  ;;  %v3310_v0 = vmin.f32 %v616_v46, 6.0  ;;  %vm3397_vm6 = vcmp.ne.s32.totalorder %v744_v34, 0 }
  0xb8   : > { %4608 = vst [vmem:[#allocation11_spill] sm:$0xff] %v3292_v52  ;;  %v4575_v5 = vrot.slane %v3292_v52, 7  ;;  %v3331_v10 = vmul.f32 %v3273_v41, %v3292_v52  ;;  %v4574_v11 = vrot.slane %v3292_v52, 1  ;;  %v1585_v12 = vmul.f32 %v3275_v42, %v3292_v52 }
  0xb9   : > { %v560_v27 = vpop.f32.mrf.mxu0  ;;  %v593_v28 = vpop.f32.mrf.mxu1  ;;  %4611 = vst [vmem:[#allocation12_spill] sm:$0xff] %v3310_v0  ;;  %v3339_v16 = vmul.f32 %v3284_v45, %v3292_v52  ;;  %v3347_v18 = vmul.f32 %v3268_v38, %v3292_v52  ;;  %v3358_v24 = vmul.f32 %v3266_v37, %v3292_v52 }
  0xba   : > { %v561_v30 = vadd.f32 %v3251_v25, %v560_v27  ;;  %v594_v56 = vadd.f32 %v3251_v25, %v593_v28  ;;  %v599_v15 = vpop.f32.mrf.mxu2 }
  0xbb   : > { %v600_v33 = vadd.f32 %v3251_v25, %v599_v15 }
  0xbc   : > { %v606_v35 = vmax.f32 %v561_v30, 0.0  ;;  %v617_v8 = vmax.f32 %v594_v56, 0.0  ;;  %v786_v30 = vand.u32 15, %v3323_v7 }
  0xbd   : > { %v619_v62 = vmax.f32 %v600_v33, 0.0 }
  0xbe   : > { %v3286_v47 = vmin.f32 %v606_v35, 6.0  ;;  %v3366_v31 = vmin.f32 %v617_v8, 6.0  ;;  %vm3454_vm9 = vcmp.ne.s32.totalorder %v786_v30, 0 }
  0xc0   : > { %4606 = vst [vmem:[#allocation9_spill] sm:$0xff] %v3286_v47  ;;  %v1026_v1 = vrot.slane %v3286_v47, 1  ;;  %v1167_v6 = vrot.slane %v3286_v47, 7  ;;  %v3378_v46 = vmul.f32 %v3273_v41, %v3286_v47  ;;  %v1288_v59 = vmul.f32 %v3284_v45, %v3286_v47 }
  0xc1   : > { %v563_v48 = vpop.f32.mrf.mxu0  ;;  %v596_v49 = vpop.f32.mrf.mxu1  ;;  %4618 = vst [vmem:[#allocation15_spill] sm:$0xff] %v3366_v31  ;;  %v3406_v57 = vmul.f32 %v3266_v37, %v3286_v47 }
  0xc2   : > { %v564_v53 = vadd.f32 %v3251_v25, %v563_v48  ;;  %v597_v19 = vadd.f32 %v3251_v25, %v596_v49  ;;  %v3353_v22 = vsel %vm1020_vm2, %v4574_v11, %v1026_v1  ;;  %v1168_v29 = vsel %vm1161_vm1, %v4575_v5, %v1167_v6 }
  0xc3   : > { %4617 = vst [vmem:[#allocation14_spill] sm:$0xff] %v3353_v22  ;;  %v1568_v39 = vmul.f32 %v3290_v51, %v3353_v22  ;;  %v3382_v48 = vmul.f32 %v3275_v42, %v3286_v47  ;;  %v1305_v49 = vmul.f32 %v3295_v54, %v1168_v29  ;;  %v3415_v15 = vmul.f32 %v3282_v44, %v3353_v22 }
  0xc4   : > { %v607_v60 = vmax.f32 %v564_v53, 0.0  ;;  %v618_v43 = vmax.f32 %v597_v19, 0.0  ;;  %4622 = vst [vmem:[#allocation17_spill] sm:$0xff] %v3406_v57  ;;  %v3418_v19 = vmul.f32 %v3297_v55, %v1168_v29 }
  0xc5   : > { %v3408_v7 = vadd.f32 %v1585_v12, %v1568_v39 }
  0xc6   : > { %v3318_v4 = vmin.f32 %v607_v60, 6.0  ;;  %v3393_v60 = vmul.f32 %v3268_v38, %v3286_v47  ;;  %4623 = vst [vmem:[#allocation18_spill] sm:$0xff] %v3418_v19 }
  0xc8   : > { %v1169_v14 = vrot.slane %v3318_v4, 7  ;;  %v4573_v40 = vrot.slane %v3318_v4, 1  ;;  %4619 = vst [vmem:[#allocation16_spill] sm:$0xff] %v3393_v60  ;;  %v1910_v13 = vmul.f32 %v3304_v58, %v3318_v4  ;;  %v3460_v23 = vmul.f32 %v3275_v42, %v3318_v4 }
  0xc9   : > { %v566_v20 = vpop.f32.mrf.mxu0  ;;  %v662_v21 = vpop.f32.mrf.mxu1 }
  0xca   : > { %v567_v27 = vadd.f32 %v3251_v25, %v566_v20  ;;  %v663_v28 = vadd.f32 %v3251_v25, %v662_v21  ;;  %v1170_v32 = vsel %vm1161_vm1, %v1167_v6, %v1169_v14  ;;  %v3402_v6 = vmul.f32 %v3288_v50, %v1168_v29 }
  0xcb   : > { %v3387_v56 = vsel %vm3300_vm3, %v1170_v32, 0.0  ;;  %v1029_v8 = vsel %vm1020_vm2, %v1026_v1, %v4573_v40  ;;  %v3420_v20 = vmin.f32 %v618_v43, 6.0  ;;  %v3428_v32 = vadd.f32 %v1305_v49, %v1288_v59 }
  0xcc   : > { %v608_v35 = vmax.f32 %v567_v27, 0.0  ;;  %v668_v36 = vmax.f32 %v663_v28, 0.0  ;;  %v1927_v12 = vmul.f32 %v3308_v63, %v3387_v56  ;;  %v725_v1 = vadd.s32 40, %v3253_v26 }
  0xcd   : > { %4624 = vst [vmem:[#allocation19_spill] sm:$0xff] %v3420_v20  ;;  %v3448_v43 = vsel %vm3341_vm5, %v1029_v8, 0.0  ;;  %v3452_v49 = vmul.f32 %v3273_v41, %v3318_v4  ;;  %v3467_v40 = vmul.f32 %v3268_v38, %v3318_v4  ;;  %v3475_v11 = vmul.f32 %v3288_v50, %v3387_v56 }
  0xce   : > { %v670_v53 = vmin.f32 %v668_v36, 6.0  ;;  %v3395_v61 = vmin.f32 %v608_v35, 6.0  ;;  %v3443_v36 = vmin.f32 %v619_v62, 6.0  ;;  %v1289_v62 = vmul.f32 %v3284_v45, %v3318_v4 }
  0xcf   : > { %v1943_v8 = vadd.f32 %v1927_v12, %v1910_v13  ;;  %4632 = vst [vmem:[#allocation21_spill] sm:$0xff] %v3467_v40  ;;  %v602_v13 = vpop.f32.mrf.mxu2  ;;  %v1306_v3 = vmul.f32 %v3295_v54, %v3387_v56  ;;  %v4635_v40 = vrot.slane %v3292_v52, 7 }
  0xd0   : > { %v3433_v33 = vsel %vm3325_vm4, %v670_v53, 0.0  ;;  %4629 = vst [vmem:[#allocation20_spill] sm:$0xff] %v3443_v36  ;;  %v1171_v39 = vrot.slane %v3395_v61, 7  ;;  %v3488_v47 = vadd.f32 %v3251_v25, %v602_v13  ;;  %v1911_v0 = vmul.f32 %v3304_v58, %v3395_v61 }
  0xd1   : > { %v569_v21 = vpop.f32.mrf.mxu0  ;;  %v665_v27 = vpop.f32.mrf.mxu1  ;;  %v1162_v17 = vrot.slane %v3433_v33, 7  ;;  %4634 = vst [vmem:[#allocation23_spill] sm:$0xff] %v3475_v11  ;;  %v1021_v5 = vrot.slane %v3433_v33, 1  ;;  %v1651_v9 = vmul.f32 %v3268_v38, %v3433_v33  ;;  %v4637_v60 = vrot.slane %v3395_v61, 1 }
  0xd2   : > { %v570_v29 = vadd.f32 %v3251_v25, %v569_v21  ;;  %v666_v34 = vadd.f32 %v3251_v25, %v665_v27  ;;  %v779_v27 = vand.u32 15, %v725_v1  ;;  %v3482_v1 = vsel %vm1161_vm1, %v1169_v14, %v1171_v39 }
  0xd3   : > { %v1221_v12 = vsel %vm1161_vm1, 0.0, %v1162_v17  ;;  %v1976_v14 = vadd.f32 %v3331_v10, %v1943_v8  ;;  %v1928_v22 = vmul.f32 %v3308_v63, %v3482_v1  ;;  %v4636_v8 = vrot.slane %v3292_v52, 1 }
  0xd4   : > { %v609_v53 = vmax.f32 %v570_v29, 0.0  ;;  %v669_v59 = vmax.f32 %v666_v34, 0.0  ;;  %v1569_v34 = vmul.f32 %v3290_v51, %v3448_v43  ;;  %v1262_v13 = vsel %vm3397_vm6, %v1221_v12, 0.0 }
  0xd5   : > { %vm3525_vm11 = vcmp.ne.s32.totalorder %v779_v27, 15  ;;  %v1944_v27 = vadd.f32 %v1928_v22, %v1911_v0  ;;  %v3552_v0 = vmul.f32 %v3282_v44, %v3448_v43  ;;  %v620_v35 = vmax.f32 %v3488_v47, 0.0 }
  0xd6   : > { %v3469_v29 = vmin.f32 %v609_v53, 6.0  ;;  %v671_v30 = vmin.f32 %v669_v59, 6.0 }
  0xd8   : > { %4633 = vst [vmem:[#allocation22_spill] sm:$0xff] %v3469_v29  ;;  %v712_v59 = vsel %vm3325_vm4, %v671_v30, 0.0 }
  0xd9   : > { %v1022_v36 = vrot.slane %v712_v59, 1  ;;  %v1163_v20 = vrot.slane %v712_v59, 7  ;;  %v572_v31 = vpop.f32.mrf.mxu0  ;;  %v1338_v22 = vmul.f32 %v3266_v37, %v712_v59 }
  0xda   : > { %v573_v30 = vadd.f32 %v3251_v25, %v572_v31  ;;  %v4638_v31 = vrot.slane %v3318_v4, 1 }
  0xdb   : > { %v1023_v53 = vsel %vm1020_vm2, %v1021_v5, %v1022_v36  ;;  %v1166_v10 = vsel %vm1161_vm1, %v1163_v20, %v4635_v40  ;;  %v1025_v19 = vsel %vm1020_vm2, %v1022_v36, %v4636_v8  ;;  %v4639_v40 = vrot.slane %v3469_v29, 7 }
  0xdc   : > { %v3515_v2 = vsel %vm1020_vm2, %v4638_v31, %v4637_v60  ;;  %v3519_v12 = vsel %vm3422_vm7, %v1166_v10, 0.0  ;;  %v1618_v5 = vmul.f32 %v3282_v44, %v1023_v53  ;;  %v610_v57 = vmax.f32 %v573_v30, 0.0 }
  0xdd   : > { %v1174_v52 = vsel %vm1161_vm1, %v1171_v39, %v4639_v40  ;;  %v1337_v8 = vmul.f32 %v3266_v37, %v3433_v33  ;;  %v1993_v60 = vmul.f32 %v3288_v50, %v3519_v12  ;;  %v1304_v28 = vmul.f32 %v3295_v54, %v3519_v12 }
  0xde   : > { %v1122_v53 = vsel %vm3439_vm8, %v1025_v19, 0.0  ;;  %v1634_v30 = vadd.f32 %v1618_v5, %v3408_v7  ;;  %v1370_v39 = vmul.f32 %v3297_v55, %v1262_v13  ;;  %v1570_v10 = vmul.f32 %v3290_v51, %v3515_v2 }
  0xdf   : > { %v3541_v31 = vmin.f32 %v610_v57, 6.0  ;;  %v2009_v33 = vadd.f32 %v1993_v60, %v1976_v14  ;;  %v1320_v40 = vadd.f32 %v1304_v28, %v3339_v16  ;;  %v3546_v50 = vsel %vm3454_vm9, %v1174_v52, 0.0  ;;  %v697_v28 = vpop.f32.mrf.mxu2 }
  0xe0   : > { %v1667_v11 = vadd.f32 %v1651_v9, %v1634_v30  ;;  %v1602_v19 = vadd.f32 %v3382_v48, %v1569_v34  ;;  %v1619_v7 = vmul.f32 %v3282_v44, %v1122_v53  ;;  %v1322_v52 = vadd.f32 %v1306_v3, %v1289_v62 }
  0xe1   : > { %4642 = vst [vmem:[#allocation24_spill] sm:$0xff] %v3541_v31  ;;  %v575_v57 = vpop.f32.mrf.mxu0  ;;  %2815 = vmatmul.msk.f32.vlgmr.msra.gmra.mxu2 %vm1405_vm10, %v2009_v33  ;;  %v1353_v16 = vadd.f32 %v1337_v8, %v1320_v40  ;;  %v1977_v48 = vadd.f32 %v3378_v46, %v1944_v27  ;;  %v1164_v34 = vsel %vm1161_vm1, %v1162_v17, %v1163_v20  ;;  %v1175_v47 = vrot.slane %v3541_v31, 7 }
  0xe2   : > { %v576_v21 = vadd.f32 %v3251_v25, %v575_v57  ;;  %2799 = vmatmul.msk.f32.vlgmr.msra.gmra.mxu1 %vm1405_vm10, %v1667_v11  ;;  %v1929_v14 = vmul.f32 %v3308_v63, %v3546_v50  ;;  %v1912_v13 = vmul.f32 %v3304_v58, %v3469_v29  ;;  %v1603_v5 = vadd.f32 %v3460_v23, %v1570_v10 }
  0xe3   : > { %v1386_v9 = vadd.f32 %v1370_v39, %v1353_v16  ;;  %v1635_v62 = vadd.f32 %v1619_v7, %v1602_v19  ;;  %v1652_v8 = vmul.f32 %v3268_v38, %v712_v59  ;;  %v1032_v11 = vrot.slane %v3469_v29, 1 }
  0xe4   : > { %v611_v3 = vmax.f32 %v576_v21, 0.0  ;;  %v1354_v46 = vadd.f32 %v1338_v22, %v3428_v32  ;;  %v1371_v20 = vmul.f32 %v3297_v55, %v1164_v34  ;;  %v3575_v17 = vmul.f32 %v3266_v37, %v3318_v4 }
  0xe5   : > { %2783 = vmatmul.msk.f32.vlgmr.msrb.gmra.mxu0 %vm1405_vm10, %v1386_v9  ;;  %v3579_v23 = vmul.f32 %v3297_v55, %v3387_v56  ;;  %v1945_v59 = vadd.f32 %v1929_v14, %v1912_v13  ;;  %v1355_v53 = vadd.f32 %v3358_v24, %v1322_v52  ;;  %v4643_v30 = vrot.slane %v3395_v61, 1 }
  0xe6   : > { %v3581_v60 = vmin.f32 %v611_v3, 6.0  ;;  %v2010_v39 = vadd.f32 %v3402_v6, %v1977_v48  ;;  %v3588_v27 = vmin.f32 %v620_v35, 6.0  ;;  %v4644_v10 = vrot.slane %v3469_v29, 7 }
  0xe7   : > { %v1033_v32 = vsel %vm1020_vm2, %v4643_v30, %v1032_v11  ;;  %v1668_v40 = vadd.f32 %v1652_v8, %v1635_v62  ;;  %v1636_v24 = vadd.f32 %v3415_v15, %v1603_v5  ;;  %v1963_v6 = vmul.f32 %v3273_v41, %v3395_v61 }
  0xe8   : > { %v3593_v33 = vsel %vm1161_vm1, %v4644_v10, %v1175_v47  ;;  %v3597_v56 = vsel %vm3525_vm11, %v1033_v32, 0.0  ;;  %v728_v19 = vadd.s32 64, %v3253_v26  ;;  %v1387_v22 = vadd.f32 %v1371_v20, %v1354_v46  ;;  %v4646_v10 = vld [vmem:[#allocation10_spill] sm:$0xff] }
  0xe9   : > { %v578_v7 = vpop.f32.mrf.mxu0  ;;  %2816 = vmatmul.msk.f32.gmra.mxu2 %vm1405_vm10, %v2010_v39  ;;  %v698_v36 = vadd.f32 %v3251_v25, %v697_v28  ;;  %v1372_v57 = vmul.f32 %v3297_v55, %v3519_v12  ;;  %v1177_v15 = vrot.slane %v3581_v60, 7  ;;  %v1978_v35 = vadd.f32 %v3452_v49, %v1945_v59  ;;  %v4645_v59 = vld [vmem:[#allocation23_spill] sm:$0xff] }
  0xea   : > { %v579_v16 = vadd.f32 %v3251_v25, %v578_v7  ;;  %2800 = vmatmul.msk.f32.gmra.mxu1 %vm1405_vm10, %v1668_v40  ;;  %v1930_v52 = vmul.f32 %v3308_v63, %v3593_v33  ;;  %v1571_v21 = vmul.f32 %v3290_v51, %v3597_v56  ;;  %v1307_v48 = vmul.f32 %v3295_v54, %v3482_v1 }
  0xeb   : > { %v800_v34 = vand.u32 15, %v728_v19  ;;  %v1178_v12 = vsel %vm1161_vm1, %v1175_v47, %v1177_v15  ;;  %v1034_v14 = vrot.slane %v3541_v31, 1  ;;  %v1669_v13 = vadd.f32 %v3347_v18, %v1636_v24 }
  0xec   : > { %v612_v9 = vmax.f32 %v579_v16, 0.0  ;;  %v1913_v49 = vmul.f32 %v3304_v58, %v3541_v31  ;;  %v703_v3 = vmax.f32 %v698_v36, 0.0  ;;  %v1588_v62 = vmul.f32 %v3275_v42, %v3395_v61 }
  0xed   : > { %2784 = vmatmul.msk.f32.gmra.mxu0 %vm1405_vm10, %v1387_v22  ;;  %v1290_v8 = vmul.f32 %v3284_v45, %v3395_v61  ;;  %vm1149_vm12 = vcmp.ne.s32.totalorder %v800_v34, 0  ;;  %v3637_v18 = vsel %vm1020_vm2, %v1032_v11, %v1034_v14  ;;  %v2011_v28 = vadd.f32 %v4645_v59, %v1978_v35  ;;  %v4647_v34 = vld [vmem:[#allocation17_spill] sm:$0xff] }
  0xee   : > { %v3632_v47 = vmin.f32 %v612_v9, 6.0  ;;  %v1946_v46 = vadd.f32 %v1930_v52, %v1913_v49  ;;  %v3634_v20 = vsel %vm1149_vm12, %v1178_v12, 0.0  ;;  %v1388_v30 = vadd.f32 %v1372_v57, %v1355_v53 }
  0xef   : > { %v1604_v32 = vadd.f32 %v1588_v62, %v1571_v21  ;;  %v1323_v39 = vadd.f32 %v1307_v48, %v1290_v8  ;;  %v1996_v40 = vmul.f32 %v4646_v10, %v3482_v1  ;;  %v1931_v24 = vmul.f32 %v3308_v63, %v3634_v20 }
  0xf0   : > { %v1179_v19 = vrot.slane %v3632_v47, 7  ;;  %v727_v7 = vadd.s32 56, %v3253_v26  ;;  %v1914_v11 = vmul.f32 %v3304_v58, %v3581_v60  ;;  %v1572_v53 = vmul.f32 %v3290_v51, %v3637_v18 }
  0xf1   : > { %v581_v22 = vpop.f32.mrf.mxu0  ;;  %2817 = vmatmul.msk.f32.gmra.mxu2 %vm1405_vm10, %v2011_v28  ;;  %v1308_v36 = vmul.f32 %v3295_v54, %v3546_v50  ;;  %v1036_v57 = vrot.slane %v3581_v60, 1  ;;  %v1979_v35 = vadd.f32 %v1963_v6, %v1946_v46  ;;  %v1637_v48 = vadd.f32 %v3552_v0, %v1604_v32 }
  0xf2   : > { %v582_v16 = vadd.f32 %v3251_v25, %v581_v22  ;;  %2801 = vmatmul.msk.f32.gmra.mxu1 %vm1405_vm10, %v1669_v13  ;;  %v3657_v52 = vsel %vm1161_vm1, %v1177_v15, %v1179_v19  ;;  %v793_v21 = vand.u32 15, %v727_v7  ;;  %v1356_v12 = vadd.f32 %v4647_v34, %v1323_v39  ;;  %v4650_v22 = vld [vmem:[#allocation18_spill] sm:$0xff] }
  0xf3   : > { %v1589_v9 = vmul.f32 %v3275_v42, %v3469_v29  ;;  %v1291_v49 = vmul.f32 %v3284_v45, %v3469_v29  ;;  %v1947_v8 = vadd.f32 %v1931_v24, %v1914_v11  ;;  %v1037_v13 = vsel %vm1020_vm2, %v1034_v14, %v1036_v57  ;;  %v4648_v24 = vld [vmem:[#allocation16_spill] sm:$0xff] }
  0xf4   : > { %v613_v62 = vmax.f32 %v582_v16, 0.0  ;;  %vm987_vm13 = vcmp.ne.s32.totalorder %v793_v21, 15  ;;  %v3666_v6 = vmin.f32 %v703_v3, 6.0  ;;  %v1932_v0 = vmul.f32 %v3308_v63, %v3657_v52 }
  0xf5   : > { %2785 = vmatmul.msk.f32.gmra.mxu0 %vm1405_vm10, %v1388_v30  ;;  %v1605_v15 = vadd.f32 %v1589_v9, %v1572_v53  ;;  %v1324_v46 = vadd.f32 %v1308_v36, %v1291_v49  ;;  %v2012_v28 = vadd.f32 %v1996_v40, %v1979_v35  ;;  %v1964_v32 = vmul.f32 %v3273_v41, %v3469_v29 }
  0xf6   : > { %v3671_v59 = vmin.f32 %v613_v62, 6.0  ;;  %v1997_v39 = vmul.f32 %v4646_v10, %v3546_v50  ;;  %v1670_v14 = vadd.f32 %v4648_v24, %v1637_v48  ;;  %v1622_v3 = vmul.f32 %v3282_v44, %v3515_v2 }
  0xf7   : > { %v1915_v30 = vmul.f32 %v3304_v58, %v3632_v47  ;;  %v3682_v7 = vsel %vm987_vm13, %v1037_v13, 0.0  ;;  %v1389_v11 = vadd.f32 %v4650_v22, %v1356_v12  ;;  %v1980_v53 = vadd.f32 %v1964_v32, %v1947_v8 }
  0xf8   : > { %4649 = vst [vmem:[#allocation23_spill] sm:$0xff] %v3682_v7  ;;  %v730_v40 = vadd.s32 80, %v3253_v26  ;;  %v1181_v36 = vrot.slane %v3671_v59, 7  ;;  %v1638_v35 = vadd.f32 %v1622_v3, %v1605_v15  ;;  %v1357_v21 = vadd.f32 %v3575_v17, %v1324_v46 }
  0xf9   : > { %v584_v16 = vpop.f32.mrf.mxu0  ;;  %2818 = vmatmul.msk.f32.gmra.mxu2 %vm1405_vm10, %v2012_v28  ;;  %v1948_v48 = vadd.f32 %v1932_v0, %v1915_v30  ;;  %v1965_v34 = vmul.f32 %v3273_v41, %v3541_v31  ;;  %v1573_v12 = vmul.f32 %v3290_v51, %v3682_v7  ;;  %v1998_v8 = vmul.f32 %v4646_v10, %v3593_v33 }
  0xfa   : > { %v585_v9 = vadd.f32 %v3251_v25, %v584_v16  ;;  %2802 = vmatmul.msk.f32.gmra.mxu1 %vm1405_vm10, %v1670_v14  ;;  %v814_v49 = vand.u32 15, %v730_v40  ;;  %v1182_v62 = vsel %vm1161_vm1, %v1179_v19, %v1181_v36  ;;  %v1590_v17 = vmul.f32 %v3275_v42, %v3541_v31  ;;  %v4651_v19 = vld [vmem:[#allocation21_spill] sm:$0xff] }
  0xfb   : > { %v1623_v13 = vmul.f32 %v3282_v44, %v3597_v56  ;;  %v1038_v15 = vrot.slane %v3632_v47, 1  ;;  %v2013_v0 = vadd.f32 %v1997_v39, %v1980_v53  ;;  %v1309_v28 = vmul.f32 %v3295_v54, %v3593_v33 }
  0xfc   : > { %v614_v46 = vmax.f32 %v585_v9, 0.0  ;;  %vm1151_vm14 = vcmp.ne.s32.totalorder %v814_v49, 0  ;;  %v1671_v32 = vadd.f32 %v4651_v19, %v1638_v35  ;;  %v1981_v24 = vadd.f32 %v1965_v34, %v1948_v48 }
  0xfd   : > { %2786 = vmatmul.msk.f32.gmra.mxu0 %vm1405_vm10, %v1389_v11  ;;  %v3707_v14 = vsel %vm1151_vm14, %v1182_v62, 0.0  ;;  %v3712_v3 = vsel %vm1020_vm2, %v1036_v57, %v1038_v15  ;;  %v1390_v39 = vadd.f32 %v3579_v23, %v1357_v21  ;;  %v1606_v22 = vadd.f32 %v1590_v17, %v1573_v12 }
  0xfe   : > { %v3714_v30 = vmin.f32 %v614_v46, 6.0  ;;  %v1292_v53 = vmul.f32 %v3284_v45, %v3541_v31  ;;  %v1656_v11 = vmul.f32 %v3268_v38, %v3395_v61  ;;  %v1342_v40 = vmul.f32 %v3266_v37, %v3395_v61 }
  0xff   : > { %v1933_v16 = vmul.f32 %v3308_v63, %v3707_v14  ;;  %v1574_v57 = vmul.f32 %v3290_v51, %v3712_v3  ;;  %v1375_v23 = vmul.f32 %v3297_v55, %v3482_v1  ;;  %v732_v21 = vadd.s32 96, %v3253_v26 }
 0x100   : > { %v1325_v35 = vadd.f32 %v1309_v28, %v1292_v53  ;;  %v1183_v48 = vrot.slane %v3714_v30, 7  ;;  %v2014_v9 = vadd.f32 %v1998_v8, %v1981_v24  ;;  %v1916_v12 = vmul.f32 %v3304_v58, %v3671_v59 }
 0x101   : > { %v587_v34 = vpop.f32.mrf.mxu0  ;;  %2819 = vmatmul.msk.f32.gmra.mxu2 %vm1405_vm10, %v2013_v0  ;;  %v1591_v49 = vmul.f32 %v3275_v42, %v3581_v60  ;;  %v1310_v62 = vmul.f32 %v3295_v54, %v3634_v20  ;;  %v1639_v1 = vadd.f32 %v1623_v13, %v1606_v22  ;;  %v1966_v46 = vmul.f32 %v3273_v41, %v3581_v60 }
 0x102   : > { %v588_v17 = vadd.f32 %v3251_v25, %v587_v34  ;;  %2803 = vmatmul.msk.f32.gmra.mxu1 %vm1405_vm10, %v1671_v32  ;;  %v1999_v8 = vmul.f32 %v4646_v10, %v3634_v20  ;;  %v1949_v0 = vadd.f32 %v1933_v16, %v1916_v12  ;;  %v1293_v19 = vmul.f32 %v3284_v45, %v3581_v60 }
 0x103   : > { %v1607_v28 = vadd.f32 %v1591_v49, %v1574_v57  ;;  %v3747_v24 = vsel %vm1161_vm1, %v1181_v36, %v1183_v48  ;;  %v1358_v5 = vadd.f32 %v1342_v40, %v1325_v35  ;;  %v1624_v25 = vmul.f32 %v3282_v44, %v3637_v18 }
 0x104   : > { %v615_v53 = vmax.f32 %v588_v17, 0.0  ;;  %v828_v13 = vand.u32 15, %v732_v21  ;;  %v1657_v32 = vmul.f32 %v3268_v38, %v3469_v29  ;;  %v1326_v22 = vadd.f32 %v1310_v62, %v1293_v19 }
 0x105   : > { %2787 = vmatmul.msk.f32.gmra.mxu0 %vm1405_vm10, %v1390_v39  ;;  %v1917_v16 = vmul.f32 %v3304_v58, %v3714_v30  ;;  %v1934_v57 = vmul.f32 %v3308_v63, %v3747_v24  ;;  %v1672_v34 = vadd.f32 %v1656_v11, %v1639_v1  ;;  %v1343_v40 = vmul.f32 %v3266_v37, %v3469_v29 }
 0x106   : > { %v3758_v36 = vmin.f32 %v615_v53, 6.0  ;;  %v729_v35 = vadd.s32 72, %v3253_v26  ;;  %v1982_v21 = vadd.f32 %v1966_v46, %v1949_v0  ;;  %v1640_v39 = vadd.f32 %v1624_v25, %v1607_v28 }
 0x107   : > { %v1950_v12 = vadd.f32 %v1934_v57, %v1917_v16  ;;  %v1040_v49 = vrot.slane %v3671_v59, 1  ;;  %v1391_v62 = vadd.f32 %v1375_v23, %v1358_v5  ;;  %vm1153_vm15 = vcmp.ne.s32.totalorder %v828_v13, 0 }
 0x108   : > { %4652 = vst [vmem:[#allocation10_spill] sm:$0xff] %v3758_v36  ;;  %v1185_v17 = vrot.slane %v3758_v36, 7  ;;  %v1967_v19 = vmul.f32 %v3273_v41, %v3632_v47  ;;  %v1347_v11 = vmul.f32 %v3266_v37, %v3671_v59  ;;  %v1380_v1 = vmul.f32 %v3297_v55, %v3707_v14 }
 0x109   : > { %2820 = vmatmul.msk.f32.gmra.mxu2 %vm1405_vm10, %v2014_v9  ;;  %v1359_v46 = vadd.f32 %v1343_v40, %v1326_v22  ;;  %v807_v0 = vand.u32 15, %v729_v35  ;;  %v1376_v23 = vmul.f32 %v3297_v55, %v3546_v50  ;;  %v1041_v9 = vsel %vm1020_vm2, %v1038_v15, %v1040_v49 }
 0x10a   : > { %2804 = vmatmul.msk.f32.gmra.mxu1 %vm1405_vm10, %v1672_v34  ;;  %v1186_v5 = vsel %vm1161_vm1, %v1183_v48, %v1185_v17  ;;  %v1983_v28 = vadd.f32 %v1967_v19, %v1950_v12  ;;  %v2015_v53 = vadd.f32 %v1999_v8, %v1982_v21  ;;  %v1673_v25 = vadd.f32 %v1657_v32, %v1640_v39  ;;  %v4654_v32 = vld [vmem:[#allocation12_spill] sm:$0xff] }
 0x10b   : > { %v3779_v13 = vsel %vm1153_vm15, %v1186_v5, 0.0  ;;  %vm989_vm0 = vcmp.ne.s32.totalorder %v807_v0, 15  ;;  %v1297_v22 = vmul.f32 %v3284_v45, %v3758_v36  ;;  %v2000_v48 = vmul.f32 %v4646_v10, %v3657_v52 }
 0x10c   : > { %v1314_v16 = vmul.f32 %v3295_v54, %v3779_v13  ;;  %v3787_v50 = vsel %vm989_vm0, %v1041_v9, 0.0  ;;  %v1392_v57 = vadd.f32 %v1376_v23, %v1359_v46  ;;  %v1592_v8 = vmul.f32 %v3275_v42, %v3632_v47 }
 0x10d   : > { %4653 = vst [vmem:[#allocation17_spill] sm:$0xff] %v3787_v50  ;;  %2788 = vmatmul.msk.f32.gmra.mxu0 %vm1405_vm10, %v1391_v62  ;;  %v1575_v15 = vmul.f32 %v3290_v51, %v3787_v50  ;;  %v1187_v34 = vrot.slane %v4654_v32, 7  ;;  %v2016_v35 = vadd.f32 %v2000_v48, %v1983_v28  ;;  %v1294_v21 = vmul.f32 %v3284_v45, %v3632_v47 }
 0x10e   : > { %v1330_v40 = vadd.f32 %v1314_v16, %v1297_v22  ;;  %v1311_v39 = vmul.f32 %v3295_v54, %v3657_v52  ;;  %v1625_v62 = vmul.f32 %v3282_v44, %v3682_v7  ;;  %v1298_v46 = vmul.f32 %v3284_v45, %v4654_v32 }
 0x10f   : > { %v1608_v12 = vadd.f32 %v1592_v8, %v1575_v15  ;;  %v3802_v19 = vsel %vm1161_vm1, %v1185_v17, %v1187_v34  ;;  %v1344_v28 = vmul.f32 %v3266_v37, %v3541_v31  ;;  %v1348_v22 = vmul.f32 %v3266_v37, %v3714_v30 }
 0x110   : > { %v1363_v0 = vadd.f32 %v1347_v11, %v1330_v40  ;;  %v1315_v5 = vmul.f32 %v3295_v54, %v3802_v19  ;;  %v1327_v23 = vadd.f32 %v1311_v39, %v1294_v21  ;;  %v1918_v17 = vmul.f32 %v3304_v58, %v3758_v36 }
 0x111   : > { %2821 = vmatmul.msk.f32.gmra.mxu2 %vm1405_vm10, %v2015_v53  ;;  %v1641_v9 = vadd.f32 %v1625_v62, %v1608_v12  ;;  %v1935_v16 = vmul.f32 %v3308_v63, %v3779_v13  ;;  %v1042_v8 = vrot.slane %v3714_v30, 1  ;;  %v1658_v53 = vmul.f32 %v3268_v38, %v3541_v31 }
 0x112   : > { %2805 = vmatmul.msk.f32.gmra.mxu1 %vm1405_vm10, %v1673_v25  ;;  %v1396_v11 = vadd.f32 %v1380_v1, %v1363_v0  ;;  %v1331_v48 = vadd.f32 %v1315_v5, %v1298_v46  ;;  %v1360_v15 = vadd.f32 %v1344_v28, %v1327_v23  ;;  %v1381_v40 = vmul.f32 %v3297_v55, %v3747_v24  ;;  %v4655_v5 = vld [vmem:[#allocation15_spill] sm:$0xff] }
 0x113   : > { %v1377_v21 = vmul.f32 %v3297_v55, %v3593_v33  ;;  %v1951_v39 = vadd.f32 %v1935_v16, %v1918_v17  ;;  %v1968_v1 = vmul.f32 %v3273_v41, %v3671_v59  ;;  %v2001_v25 = vmul.f32 %v4646_v10, %v3707_v14 }
 0x114   : > { %2793 = vmatmul.msk.f32.vlgmr.msra.gmra.mxu3 %vm1405_vm10, %v1396_v11  ;;  %v1364_v12 = vadd.f32 %v1348_v22, %v1331_v48  ;;  %v3831_v62 = vsel %vm1020_vm2, %v1040_v49, %v1042_v8  ;;  %v1593_v33 = vmul.f32 %v3275_v42, %v3671_v59  ;;  %v734_v0 = vadd.s32 112, %v3253_v26 }
 0x115   : > { %2789 = vmatmul.msk.f32.gmra.mxu0 %vm1405_vm10, %v1392_v57  ;;  %v1576_v46 = vmul.f32 %v3290_v51, %v3831_v62  ;;  %v1189_v23 = vrot.slane %v4655_v5, 7  ;;  %v1674_v28 = vadd.f32 %v1658_v53, %v1641_v9  ;;  %v1393_v22 = vadd.f32 %v1377_v21, %v1360_v15 }
 0x116   : > { %v1626_v17 = vmul.f32 %v3282_v44, %v3712_v3  ;;  %v1659_v49 = vmul.f32 %v3268_v38, %v3581_v60  ;;  %v1984_v16 = vadd.f32 %v1968_v1, %v1951_v39  ;;  %v842_v11 = vand.u32 15, %v734_v0 }
 0x117   : > { %v1609_v57 = vadd.f32 %v1593_v33, %v1576_v46  ;;  %v1190_v48 = vsel %vm1161_vm1, %v1187_v34, %v1189_v23  ;;  %v1397_v31 = vadd.f32 %v1381_v40, %v1364_v12  ;;  %v1299_v7 = vmul.f32 %v3284_v45, %v4655_v5 }
 0x118   : > { %v1295_v29 = vmul.f32 %v3284_v45, %v3671_v59  ;;  %v1312_v9 = vmul.f32 %v3295_v54, %v3707_v14  ;;  %vm1155_vm3 = vcmp.ne.s32.totalorder %v842_v11, 0  ;;  %v1919_v53 = vmul.f32 %v3304_v58, %v4654_v32 }
 0x119   : > { %2822 = vmatmul.msk.f32.gmra.mxu2 %vm1405_vm10, %v2016_v35  ;;  %v1642_v15 = vadd.f32 %v1626_v17, %v1609_v57  ;;  %v1936_v34 = vmul.f32 %v3308_v63, %v3802_v19  ;;  %v3857_v40 = vsel %vm1155_vm3, %v1190_v48, 0.0  ;;  %v1349_v21 = vmul.f32 %v3266_v37, %v3758_v36 }
 0x11a   : > { %2806 = vmatmul.msk.f32.gmra.mxu1 %vm1405_vm10, %v1674_v28  ;;  %v1382_v14 = vmul.f32 %v3297_v55, %v3779_v13  ;;  %v1328_v39 = vadd.f32 %v1312_v9, %v1295_v29  ;;  %v1316_v35 = vmul.f32 %v3295_v54, %v3857_v40  ;;  %v1345_v12 = vmul.f32 %v3266_v37, %v3581_v60 }
 0x11b   : > { %v1952_v1 = vadd.f32 %v1936_v34, %v1919_v53  ;;  %v731_v46 = vadd.s32 88, %v3253_v26  ;;  %v2017_v33 = vadd.f32 %v2001_v25, %v1984_v16  ;;  %v1378_v0 = vmul.f32 %v3297_v55, %v3634_v20  ;;  %v4656_v20 = vld [vmem:[#allocation19_spill] sm:$0xff] }
 0x11c   : > { %2794 = vmatmul.msk.f32.gmra.mxu3 %vm1405_vm10, %v1397_v31  ;;  %v1969_v28 = vmul.f32 %v3273_v41, %v3714_v30  ;;  %v1044_v29 = vrot.slane %v3758_v36, 1  ;;  %v1675_v17 = vadd.f32 %v1659_v49, %v1642_v15  ;;  %v1361_v57 = vadd.f32 %v1345_v12, %v1328_v39 }
 0x11d   : > { %2790 = vmatmul.msk.f32.gmra.mxu0 %vm1405_vm10, %v1393_v22  ;;  %v2002_v11 = vmul.f32 %v4646_v10, %v3747_v24  ;;  %v821_v48 = vand.u32 15, %v731_v46  ;;  %v1332_v9 = vadd.f32 %v1316_v35, %v1299_v7  ;;  %v1594_v25 = vmul.f32 %v3275_v42, %v3714_v30 }
 0x11e   : > { %v1045_v31 = vsel %vm1020_vm2, %v1042_v8, %v1044_v29  ;;  %v1191_v16 = vrot.slane %v4656_v20, 7  ;;  %v1985_v53 = vadd.f32 %v1969_v28, %v1952_v1  ;;  %v1627_v34 = vmul.f32 %v3282_v44, %v3787_v50 }
 0x11f   : > { %vm991_vm4 = vcmp.ne.s32.totalorder %v821_v48, 15  ;;  %v1300_v22 = vmul.f32 %v3284_v45, %v4656_v20  ;;  %v1365_v49 = vadd.f32 %v1349_v21, %v1332_v9  ;;  %v1660_v7 = vmul.f32 %v3268_v38, %v3632_v47 }
 0x120   : > { %v3885_v15 = vsel %vm991_vm4, %v1045_v31, 0.0  ;;  %v3890_v8 = vsel %vm1161_vm1, %v1189_v23, %v1191_v16  ;;  %v1296_v12 = vmul.f32 %v3284_v45, %v3714_v30  ;;  %v1313_v21 = vmul.f32 %v3295_v54, %v3747_v24 }
 0x121   : > { %2823 = vmatmul.msk.f32.gmra.mxu2 %vm1405_vm10, %v2017_v33  ;;  %v1577_v39 = vmul.f32 %v3290_v51, %v3885_v15  ;;  %v1317_v35 = vmul.f32 %v3295_v54, %v3890_v8  ;;  %v1398_v1 = vadd.f32 %v1382_v14, %v1365_v49  ;;  %v1394_v46 = vadd.f32 %v1378_v0, %v1361_v57 }
 0x122   : > { %2807 = vmatmul.msk.f32.gmra.mxu1 %vm1405_vm10, %v1675_v17  ;;  %v1920_v23 = vmul.f32 %v3304_v58, %v4655_v5  ;;  %v1937_v33 = vmul.f32 %v3308_v63, %v3857_v40  ;;  %v1350_v9 = vmul.f32 %v3266_v37, %v4654_v32  ;;  %v1329_v31 = vadd.f32 %v1313_v21, %v1296_v12 }
 0x123   : > { %v1610_v28 = vadd.f32 %v1594_v25, %v1577_v39  ;;  %v1333_v48 = vadd.f32 %v1317_v35, %v1300_v22  ;;  %v2018_v50 = vadd.f32 %v2002_v11, %v1985_v53  ;;  %v1383_v24 = vmul.f32 %v3297_v55, %v3802_v19 }
 0x124   : > { %2795 = vmatmul.msk.f32.gmra.mxu3 %vm1405_vm10, %v1398_v1  ;;  %v1970_v14 = vmul.f32 %v3273_v41, %v3758_v36  ;;  %v1046_v0 = vrot.slane %v4654_v32, 1  ;;  %v1346_v57 = vmul.f32 %v3266_v37, %v3632_v47  ;;  %v1379_v25 = vmul.f32 %v3297_v55, %v3657_v52 }
 0x125   : > { %2791 = vmatmul.msk.f32.gmra.mxu0 %vm1405_vm10, %v1394_v46  ;;  %v1643_v17 = vadd.f32 %v1627_v34, %v1610_v28  ;;  %v1953_v22 = vadd.f32 %v1937_v33, %v1920_v23  ;;  %v2003_v11 = vmul.f32 %v4646_v10, %v3779_v13  ;;  %v1595_v49 = vmul.f32 %v3275_v42, %v3758_v36  ;;  %v4658_v13 = vld [vmem:[#allocation20_spill] sm:$0xff] }
 0x126   : > { %v3922_v53 = vsel %vm1020_vm2, %v1044_v29, %v1046_v0  ;;  %v736_v39 = vadd.s32 128, %v3253_v26  ;;  %v1366_v35 = vadd.f32 %v1350_v9, %v1333_v48  ;;  %v1362_v34 = vadd.f32 %v1346_v57, %v1329_v31 }
 0x127   : > { %4657 = vst [vmem:[#allocation16_spill] sm:$0xff] %v3922_v53  ;;  %v1578_v12 = vmul.f32 %v3290_v51, %v3922_v53  ;;  %v1628_v52 = vmul.f32 %v3282_v44, %v3831_v62  ;;  %v1676_v21 = vadd.f32 %v1660_v7, %v1643_v17  ;;  %v1986_v1 = vadd.f32 %v1970_v14, %v1953_v22 }
 0x128   : > { %v856_v46 = vand.u32 15, %v736_v39  ;;  %v1193_v23 = vrot.slane %v4658_v13, 7  ;;  %v1399_v29 = vadd.f32 %v1383_v24, %v1366_v35  ;;  %v1661_v28 = vmul.f32 %v3268_v38, %v3671_v59 }
 0x129   : > { %2824 = vmatmul.msk.f32.gmra.mxu2 %vm1405_vm10, %v2018_v50  ;;  %v1611_v33 = vadd.f32 %v1595_v49, %v1578_v12  ;;  %v1921_v48 = vmul.f32 %v3304_v58, %v4656_v20  ;;  %v1301_v9 = vmul.f32 %v3284_v45, %v4658_v13  ;;  %v1938_v50 = vmul.f32 %v3308_v63, %v3890_v8 }
 0x12a   : > { %2808 = vmatmul.msk.f32.gmra.mxu1 %vm1405_vm10, %v1676_v21  ;;  %vm1157_vm5 = vcmp.ne.s32.totalorder %v856_v46, 0  ;;  %v1194_v7 = vsel %vm1161_vm1, %v1191_v16, %v1193_v23  ;;  %v1395_v31 = vadd.f32 %v1379_v25, %v1362_v34  ;;  %v733_v17 = vadd.s32 104, %v3253_v26 }
 0x12b   : > { %v1644_v24 = vadd.f32 %v1628_v52, %v1611_v33  ;;  %v3943_v14 = vsel %vm1157_vm5, %v1194_v7, 0.0  ;;  %v2019_v57 = vadd.f32 %v2003_v11, %v1986_v1  ;;  %v1351_v16 = vmul.f32 %v3266_v37, %v4655_v5 }
 0x12c   : > { %2796 = vmatmul.msk.f32.gmra.mxu3 %vm1405_vm10, %v1399_v29  ;;  %v1318_v22 = vmul.f32 %v3295_v54, %v3943_v14  ;;  %v1048_v49 = vrot.slane %v4655_v5, 1  ;;  %v4659_v39 = vstv %s3602_s17  ;;  %v1384_v25 = vmul.f32 %v3297_v55, %v3857_v40  ;;  %v700_v29 = vpop.f32.mrf.mxu2 }
 0x12d   : > { %vm3954_vm6 = vcmp.eq.s32.totalorder %v4659_v39, 1  ;;  %2792 = vmatmul.msk.f32.gmra.mxu0 %vm1405_vm10, %v1395_v31  ;;  %v1954_v34 = vadd.f32 %v1938_v50, %v1921_v48  ;;  %v1971_v11 = vmul.f32 %v3273_v41, %v4654_v32  ;;  %v835_v12 = vand.u32 15, %v733_v17 }
 0x12e   : > { %v1334_v52 = vadd.f32 %v1318_v22, %v1301_v9  ;;  %v1049_v21 = vsel %vm1020_vm2, %v1046_v0, %v1048_v49  ;;  %v1596_v1 = vmul.f32 %v3275_v42, %v4654_v32  ;;  %v4594_v46 = vrot.slane %v3588_v27, 7 }
 0x12f   : > { %v1677_v33 = vadd.f32 %v1661_v28, %v1644_v24  ;;  %vm993_vm7 = vcmp.ne.s32.totalorder %v835_v12, 15  ;;  %v1629_v7 = vmul.f32 %v3282_v44, %v3885_v15  ;;  %v1302_v48 = vmul.f32 %v3284_v45, %v3588_v27 }
 0x130   : > { %v1367_v50 = vadd.f32 %v1351_v16, %v1334_v52  ;;  %v3971_v31 = vsel %vm993_vm7, %v1049_v21, 0.0  ;;  %v3976_v0 = vsel %vm1161_vm1, %v1193_v23, %v4594_v46  ;;  %v1352_v9 = vmul.f32 %v3266_v37, %v4656_v20  ;;  %v2940_v23 = vld [vmem:[%s4565_s4] ss:$0 sm:$0xff] }
 0x131   : > { %2825 = vmatmul.msk.f32.gmra.mxu2 %vm1405_vm10, %v2019_v57  ;;  %v1579_v28 = vmul.f32 %v3290_v51, %v3971_v31  ;;  %v1319_v24 = vmul.f32 %v3295_v54, %v3976_v0  ;;  %v1922_v45 = vmul.f32 %v3304_v58, %v4658_v13  ;;  %v1939_v17 = vmul.f32 %v3308_v63, %v3943_v14 }
 0x132   : > { %v701_v22 = vadd.f32 %v2940_v23, %v700_v29  ;;  %2809 = vmatmul.msk.f32.gmra.mxu1 %vm1405_vm10, %v1677_v33  ;;  %v1400_v37 = vadd.f32 %v1384_v25, %v1367_v50  ;;  %v2004_v57 = vmul.f32 %v4646_v10, %v3802_v19  ;;  %v1050_v16 = vrot.slane %v4656_v20, 1  ;;  %v2941_v19 = vld [vmem:[%s4566_s5] sm:$0xff] }
 0x133   : > { %v1987_v54 = vadd.f32 %v1971_v11, %v1954_v34  ;;  %v1612_v39 = vadd.f32 %v1596_v1, %v1579_v28  ;;  %v1335_v12 = vadd.f32 %v1319_v24, %v1302_v48  ;;  %v1385_v52 = vmul.f32 %v3297_v55, %v3890_v8 }
 0x134   : > { %2797 = vmatmul.msk.f32.gmra.mxu3 %vm1405_vm10, %v1400_v37  ;;  %v1955_v21 = vadd.f32 %v1939_v17, %v1922_v45  ;;  %v1972_v29 = vmul.f32 %v3273_v41, %v4655_v5  ;;  %v4002_v33 = vsel %vm1020_vm2, %v1048_v49, %v1050_v16  ;;  %v4007_v25 = vperm.slane %v2941_v19, 0  ;;  %v2942_v17 = vld [vmem:[%s4566_s5 + $0x8] sm:$0xff] }
 0x135   : > { %v1645_v34 = vadd.f32 %v1629_v7, %v1612_v39  ;;  %v1368_v11 = vadd.f32 %v1352_v9, %v1335_v12  ;;  %v1580_v55 = vmul.f32 %v3290_v51, %v4002_v33  ;;  %v1597_v1 = vmul.f32 %v3275_v42, %v4655_v5  ;;  %v4662_v9 = vld [vmem:[#allocation13_spill] sm:$0xff] }
 0x136   : > { %v704_v50 = vmax.f32 %v701_v22, 0.0  ;;  %v1662_v49 = vmul.f32 %v3268_v38, %v3714_v30  ;;  %v2252_v28 = vmul.f32 %v4007_v25, %v3515_v2  ;;  %v2020_v24 = vadd.f32 %v2004_v57, %v1987_v54 }
 0x137   : > { %v1630_v7 = vmul.f32 %v3282_v44, %v3922_v53  ;;  %v2269_v45 = vmul.f32 %v4662_v9, %v3318_v4  ;;  %v4025_v23 = vperm.slane %v2942_v17, 0  ;;  %v4030_v22 = vsel %vm3954_vm6, %v3666_v6, 0.0 }
 0x138   : > { %v1678_v37 = vadd.f32 %v1662_v49, %v1645_v34  ;;  %v1988_v39 = vadd.f32 %v1972_v29, %v1955_v21  ;;  %v2005_v57 = vmul.f32 %v4646_v10, %v3857_v40  ;;  %v1401_v54 = vadd.f32 %v1385_v52, %v1368_v11  ;;  %v4663_v11 = vld [vmem:[#allocation14_spill] sm:$0xff] }
 0x139   : > { %2826 = vmatmul.msk.f32.gmra.mxu2 %vm1405_vm10, %v2020_v24  ;;  %v1613_v12 = vadd.f32 %v1597_v1, %v1580_v55  ;;  %v2285_v19 = vadd.f32 %v2269_v45, %v2252_v28  ;;  %v4035_v48 = vperm.slane %v2942_v17, 2  ;;  %v1923_v46 = vmul.f32 %v3304_v58, %v3588_v27  ;;  %v4664_v17 = vld [vmem:[#allocation11_spill] sm:$0xff] }
 0x13a   : > { %2810 = vmatmul.msk.f32.gmra.mxu1 %vm1405_vm10, %v1678_v37  ;;  %v1940_v6 = vmul.f32 %v3308_v63, %v3976_v0  ;;  %v735_v21 = vadd.s32 120, %v3253_v26  ;;  %v1052_v29 = vrot.slane %v4658_v13, 1  ;;  %v1197_v40 = vrot.slane %v4030_v22, 7 }
 0x13b   : > { %v706_v34 = vmin.f32 %v704_v50, 6.0  ;;  %v1646_v52 = vadd.f32 %v1630_v7, %v1613_v12  ;;  %v2302_v55 = vmul.f32 %v4025_v23, %v4663_v11  ;;  %v2021_v1 = vadd.f32 %v2005_v57, %v1988_v39 }
 0x13c   : > { %2798 = vmatmul.msk.f32.gmra.mxu3 %vm1405_vm10, %v1401_v54  ;;  %v1663_v49 = vmul.f32 %v3268_v38, %v3758_v36  ;;  %v849_v28 = vand.u32 15, %v735_v21  ;;  %v1053_v24 = vsel %vm1020_vm2, %v1050_v16, %v1052_v29  ;;  %v2335_v37 = vmul.f32 %v4035_v48, %v4664_v17 }
 0x13d   : > { %v2318_v45 = vadd.f32 %v2302_v55, %v2285_v19  ;;  %v1973_v50 = vmul.f32 %v3273_v41, %v4656_v20  ;;  %v1598_v7 = vmul.f32 %v3275_v42, %v4656_v20  ;;  %v1956_v12 = vadd.f32 %v1940_v6, %v1923_v46 }
 0x13e   : > { %vm995_vm8 = vcmp.ne.s32.totalorder %v849_v28, 15  ;;  %v2253_v39 = vmul.f32 %v4007_v25, %v3597_v56  ;;  %v738_v57 = vadd.s32 144, %v3253_v26  ;;  %v1679_v54 = vadd.f32 %v1663_v49, %v1646_v52 }
 0x13f   : > { %v4060_v21 = vsel %vm995_vm8, %v1053_v24, 0.0  ;;  %v1631_v16 = vmul.f32 %v3282_v44, %v3971_v31  ;;  %v2270_v19 = vmul.f32 %v4662_v9, %v3395_v61  ;;  %v4665_v46 = vrot.slane %v3588_v27, 7 }
 0x140   : > { %v1581_v11 = vmul.f32 %v3290_v51, %v4060_v21  ;;  %v870_v55 = vand.u32 15, %v738_v57  ;;  %v4666_v28 = vrot.slane %v3588_v27, 1  ;;  %v1924_v49 = vmul.f32 %v3304_v58, %v4030_v22 }
 0x141   : > { %v1198_v6 = vsel %vm1161_vm1, %v4665_v46, %v1197_v40  ;;  %v4080_v24 = vsel %vm3954_vm6, %v706_v34, 0.0  ;;  %2827 = vmatmul.msk.f32.gmra.mxu2 %vm1405_vm10, %v2021_v1  ;;  %v2351_v17 = vadd.f32 %v2335_v37, %v2318_v45  ;;  %v2006_v57 = vmul.f32 %v4646_v10, %v3890_v8 }
 0x142   : > { %v4074_v52 = vsel %vm1020_vm2, %v1052_v29, %v4666_v28  ;;  %2811 = vmatmul.msk.f32.gmra.mxu1 %vm1405_vm10, %v1679_v54  ;;  %v1989_v46 = vadd.f32 %v1973_v50, %v1956_v12  ;;  %v1614_v36 = vadd.f32 %v1598_v7, %v1581_v11  ;;  %v2286_v53 = vadd.f32 %v2270_v19, %v2253_v39 }
 0x143   : > { %vm1159_vm9 = vcmp.ne.s32.totalorder %v870_v55, 0  ;;  %v1199_v29 = vrot.slane %v4080_v24, 7  ;;  %v1582_v35 = vmul.f32 %v3290_v51, %v4074_v52  ;;  %v1599_v34 = vmul.f32 %v3275_v42, %v4658_v13  ;;  %v4667_v55 = vld [vmem:[#allocation9_spill] sm:$0xff] }
 0x144   : > { %v1280_v28 = vsel %vm1159_vm9, %v1198_v6, 0.0  ;;  %2831 = vmatmul.msk.f32.vlgmr.msrb.gmra.mxu3 %vm1405_vm10, %v2351_v17  ;;  %v1647_v1 = vadd.f32 %v1631_v16, %v1614_v36  ;;  %v1664_v8 = vmul.f32 %v3268_v38, %v4654_v32  ;;  %v2303_v45 = vmul.f32 %v4025_v23, %v3448_v43  ;;  %v4668_v17 = vld [vmem:[#allocation22_spill] sm:$0xff] }
 0x145   : > { %v1941_v37 = vmul.f32 %v3308_v63, %v1280_v28  ;;  %v1056_v50 = vrot.slane %v4030_v22, 1  ;;  %v2022_v7 = vadd.f32 %v2006_v57, %v1989_v46  ;;  %v1974_v39 = vmul.f32 %v3273_v41, %v4658_v13 }
 0x146   : > { %v2319_v12 = vadd.f32 %v2303_v45, %v2286_v53  ;;  %v2254_v54 = vmul.f32 %v4007_v25, %v3637_v18  ;;  %v1615_v36 = vadd.f32 %v1599_v34, %v1582_v35  ;;  %v1632_v16 = vmul.f32 %v3282_v44, %v4002_v33 }
 0x147   : > { %v1957_v19 = vadd.f32 %v1941_v37, %v1924_v49  ;;  %v737_v11 = vadd.s32 136, %v3253_v26  ;;  %v1680_v43 = vadd.f32 %v1664_v8, %v1647_v1  ;;  %v2336_v6 = vmul.f32 %v4035_v48, %v4667_v55  ;;  %v4671_v55 = vld [vmem:[#allocation24_spill] sm:$0xff] }
 0x148   : > { %v2271_v53 = vmul.f32 %v4662_v9, %v4668_v17  ;;  %v1200_v57 = vsel %vm1161_vm1, %v1197_v40, %v1199_v29  ;;  %v4669_v46 = vrot.slane %v3588_v27, 1  ;;  %v1925_v28 = vmul.f32 %v3304_v58, %v4080_v24 }
 0x149   : > { %2828 = vmatmul.msk.f32.gmra.mxu2 %vm1405_vm10, %v2022_v7  ;;  %v863_v35 = vand.u32 15, %v737_v11  ;;  %v2352_v34 = vadd.f32 %v2336_v6, %v2319_v12  ;;  %v2007_v1 = vmul.f32 %v4646_v10, %v3943_v14  ;;  %v1665_v40 = vmul.f32 %v3268_v38, %v4655_v5 }
 0x14a   : > { %v1057_v49 = vsel %vm1020_vm2, %v4669_v46, %v1056_v50  ;;  %2812 = vmatmul.msk.f32.gmra.mxu1 %vm1405_vm10, %v1680_v43  ;;  %v2287_v29 = vadd.f32 %v2271_v53, %v2254_v54  ;;  %v1990_v8 = vadd.f32 %v1974_v39, %v1957_v19  ;;  %v1648_v45 = vadd.f32 %v1632_v16, %v1615_v36  ;;  %v4670_v54 = vld [vmem:[#allocation23_spill] sm:$0xff] }
 0x14b   : > { %v1942_v37 = vmul.f32 %v3308_v63, %v1200_v57  ;;  %vm997_vm1 = vcmp.ne.s32.totalorder %v863_v35, 15  ;;  %v2304_v58 = vmul.f32 %v4025_v23, %v3515_v2  ;;  %v1600_v12 = vmul.f32 %v3275_v42, %v3588_v27 }
 0x14c   : > { %2832 = vmatmul.msk.f32.gmra.mxu3 %vm1405_vm10, %v2352_v34  ;;  %v4127_v7 = vsel %vm997_vm1, %v1057_v49, 0.0  ;;  %v2337_v39 = vmul.f32 %v4035_v48, %v3318_v4  ;;  %v1975_v63 = vmul.f32 %v3273_v41, %v3588_v27  ;;  %v2255_v19 = vmul.f32 %v4007_v25, %v4670_v54 }
 0x14d   : > { %v1583_v14 = vmul.f32 %v3290_v51, %v4127_v7  ;;  %v2320_v11 = vadd.f32 %v2304_v58, %v2287_v29  ;;  %v2023_v36 = vadd.f32 %v2007_v1, %v1990_v8  ;;  %v1681_v2 = vadd.f32 %v1665_v40, %v1648_v45 }
 0x14e   : > { %v1958_v16 = vadd.f32 %v1942_v37, %v1925_v28  ;;  %v2263_v43 = vmul.f32 %v4007_v25, %v4060_v21  ;;  %v1633_v51 = vmul.f32 %v3282_v44, %v4060_v21  ;;  %v2272_v6 = vmul.f32 %v4662_v9, %v4671_v55  ;;  %v4172_v37 = vld [vmem:[%s4568_s7] ss:$0 sm:$0xff] }
 0x14f   : > { %v1616_v42 = vadd.f32 %v1600_v12, %v1583_v14  ;;  %v2280_v4 = vmul.f32 %v4662_v9, %v4656_v20  ;;  %v2313_v41 = vmul.f32 %v4025_v23, %v3971_v31  ;;  %v2353_v53 = vadd.f32 %v2337_v39, %v2320_v11  ;;  %v4672_v12 = vld [vmem:[#allocation17_spill] sm:$0xff] }
 0x150   : > { %v2288_v57 = vadd.f32 %v2272_v6, %v2255_v19  ;;  %v1991_v49 = vadd.f32 %v1975_v63, %v1958_v16  ;;  %v2008_v44 = vmul.f32 %v4646_v10, %v3976_v0  ;;  %v1666_v35 = vmul.f32 %v3268_v38, %v4656_v20 }
 0x151   : > { %2829 = vmatmul.msk.f32.gmra.mxu2 %vm1405_vm10, %v2023_v36  ;;  %v2296_v46 = vadd.f32 %v2280_v4, %v2263_v43  ;;  %v1649_v28 = vadd.f32 %v1633_v51, %v1616_v42  ;;  %v2305_v34 = vmul.f32 %v4025_v23, %v3597_v56  ;;  %v2256_v29 = vmul.f32 %v4007_v25, %v3712_v3 }
 0x152   : > { %2813 = vmatmul.msk.f32.gmra.mxu1 %vm1405_vm10, %v1681_v2  ;;  %v2024_v8 = vadd.f32 %v2008_v44, %v1991_v49  ;;  %v2338_v10 = vmul.f32 %v4035_v48, %v3395_v61  ;;  %v2273_v0 = vmul.f32 %v4662_v9, %v3581_v60  ;;  %v2306_v58 = vmul.f32 %v4025_v23, %v3637_v18 }
 0x153   : > { %v4158_v1 = vadd.f32 %v2313_v41, %v2296_v46  ;;  %v2321_v40 = vadd.f32 %v2305_v34, %v2288_v57  ;;  %v1682_v45 = vadd.f32 %v1666_v35, %v1649_v28  ;;  %v2257_v14 = vmul.f32 %v4007_v25, %v4672_v12 }
 0x154   : > { %2833 = vmatmul.msk.f32.gmra.mxu3 %vm1405_vm10, %v2353_v53  ;;  %v2289_v56 = vadd.f32 %v2273_v0, %v2256_v29  ;;  %v2339_v63 = vmul.f32 %v4035_v48, %v4668_v17  ;;  %v2274_v19 = vmul.f32 %v4662_v9, %v3632_v47  ;;  %v2307_v6 = vmul.f32 %v4025_v23, %v4670_v54 }
 0x155   : > { %v2354_v38 = vadd.f32 %v2338_v10, %v2321_v40  ;;  %v2258_v53 = vmul.f32 %v4007_v25, %v3831_v62  ;;  %v2340_v44 = vmul.f32 %v4035_v48, %v4671_v55  ;;  %v2275_v28 = vmul.f32 %v4662_v9, %v3671_v59 }
 0x156   : > { %v2322_v61 = vadd.f32 %v2306_v58, %v2289_v56  ;;  %v2290_v43 = vadd.f32 %v2274_v19, %v2257_v14  ;;  %v2308_v55 = vmul.f32 %v4025_v23, %v3712_v3  ;;  %v2341_v19 = vmul.f32 %v4035_v48, %v3581_v60 }
 0x157   : > { %v2276_v3 = vmul.f32 %v4662_v9, %v3714_v30  ;;  %v2309_v60 = vmul.f32 %v4025_v23, %v4672_v12  ;;  %vm2576_vm12 = vcmask 261312  }
 0x158   : > { %v2355_v16 = vadd.f32 %v2339_v63, %v2322_v61  ;;  %v2323_v17 = vadd.f32 %v2307_v6, %v2290_v43  ;;  %v2259_v61 = vmul.f32 %v4007_v25, %v3885_v15 }
 0x159   : > { %2830 = vmatmul.msk.f32.gmra.mxu2 %vm1405_vm10, %v2024_v8  ;;  %v2291_v8 = vadd.f32 %v2275_v28, %v2258_v53  ;;  %v4674_v53 = vld [vmem:[#allocation16_spill] sm:$0xff]  ;;  %v2342_v28 = vmul.f32 %v4035_v48, %v3632_v47  ;;  %v2310_v47 = vmul.f32 %v4025_v23, %v3831_v62  ;;  %v2278_v62 = vmul.f32 %v4662_v9, %v4654_v32 }
 0x15a   : > { %2814 = vmatmul.msk.f32.gmra.mxu1 %vm1405_vm10, %v1682_v45  ;;  %v2356_v29 = vadd.f32 %v2340_v44, %v2323_v17 }
 0x15b   : > { %v2324_v58 = vadd.f32 %v2308_v55, %v2291_v8 }
 0x15c   : > { %2834 = vmatmul.msk.f32.gmra.mxu3 %vm1405_vm10, %v2354_v38 }
 0x15d   : > { %v2357_v43 = vadd.f32 %v2341_v19, %v2324_v58 }
 0x15f   : > { %v1748_v11 = vpop.f32.mrf.mxu1 }
 0x160   : > { %v1749_v39 = vadd.f32 %v4172_v37, %v1748_v11 }
 0x162   : > { %v1796_v36 = vmax.f32 %v1749_v39, 0.0  ;;  %v1471_v2 = vpop.f32.mrf.mxu0 }
 0x163   : > { %v1472_v18 = vadd.f32 %v4172_v37, %v1471_v2 }
 0x164   : > { %v2090_v42 = vpop.f32.mrf.mxu2  ;;  %2835 = vmatmul.msk.f32.gmra.mxu3 %vm1405_vm10, %v2355_v16  ;;  %v1812_v51 = vmin.f32 %v1796_v36, 6.0 }
 0x165   : > { %v1519_v4 = vmax.f32 %v1472_v18, 0.0  ;;  %v2091_v41 = vadd.f32 %v4172_v37, %v2090_v42  ;;  %v2292_v18 = vadd.f32 %v2276_v3, %v2259_v61  ;;  %v1058_v61 = vrot.slane %v4080_v24, 1 }
 0x166   : > { %1844 = vrot.lane.b32.xlu0 %v1812_v51, %s3043_s21  ;;  %v2343_v3 = vmul.f32 %v4035_v48, %v3671_v59 }
 0x167   : > { %v1535_v57 = vmin.f32 %v1519_v4, 6.0  ;;  %v2138_v46 = vmax.f32 %v2091_v41, 0.0  ;;  %v1751_v54 = vpop.f32.mrf.mxu1  ;;  %v2325_v17 = vadd.f32 %v2309_v60, %v2292_v18  ;;  %v1059_v59 = vsel %vm1020_vm2, %v1056_v50, %v1058_v61 }
 0x168   : > { %v1752_v49 = vadd.f32 %v4172_v37, %v1751_v54 }
 0x169   : > { %1551 = vst.msk [vmem:[%s4193_s20] sm:$0xff] %vm1405_vm10, %v1535_v57  ;;  %v2154_v35 = vmin.f32 %v2138_v46, 6.0  ;;  %v2260_v57 = vmul.f32 %v4007_v25, %v4674_v53  ;;  %v2358_v8 = vadd.f32 %v2342_v28, %v2325_v17 }
 0x16a   : > { %v1797_v34 = vmax.f32 %v1752_v49, 0.0  ;;  %v1474_v40 = vpop.f32.mrf.mxu0 }
 0x16b   : > { %v1475_v45 = vadd.f32 %v4172_v37, %v1474_v40  ;;  %2186 = vrot.lane.b32.xlu1 %v2154_v35, %s3044_s19  ;;  %v4675_v35 = vld [vmem:[#allocation10_spill] sm:$0xff] }
 0x16c   : > { %v1813_v10 = vmin.f32 %v1797_v34, 6.0  ;;  %v2093_v0 = vpop.f32.mrf.mxu2  ;;  %2836 = vmatmul.msk.f32.gmra.mxu3 %vm1405_vm10, %v2356_v29  ;;  %v2277_v12 = vmul.f32 %v4662_v9, %v4675_v35 }
 0x16d   : > { %v1520_v38 = vmax.f32 %v1475_v45, 0.0  ;;  %v2094_v56 = vadd.f32 %v4172_v37, %v2093_v0 }
 0x16e   : > { %1846 = vrot.lane.b32.xlu0 %v1813_v10, %s3043_s21  ;;  %v2293_v45 = vadd.f32 %v2277_v12, %v2260_v57 }
 0x16f   : > { %v1536_v14 = vmin.f32 %v1520_v38, 6.0  ;;  %v2139_v11 = vmax.f32 %v2094_v56, 0.0  ;;  %v1754_v39 = vpop.f32.mrf.mxu1 }
 0x170   : > { %v1755_v63 = vadd.f32 %v4172_v37, %v1754_v39  ;;  %v2326_v58 = vadd.f32 %v2310_v47, %v2293_v45  ;;  %v2261_v39 = vmul.f32 %v4007_v25, %v3971_v31  ;;  %v2311_v31 = vmul.f32 %v4025_v23, %v3885_v15 }
 0x171   : > { %1552 = vst.msk [vmem:[%s4193_s20 + $0x8] sm:$0xff] %vm1405_vm10, %v1536_v14  ;;  %v2155_v36 = vmin.f32 %v2139_v11, 6.0 }
 0x172   : > { %v1798_v2 = vmax.f32 %v1755_v63, 0.0  ;;  %v1477_v16 = vpop.f32.mrf.mxu0  ;;  %v2294_v60 = vadd.f32 %v2278_v62, %v2261_v39 }
 0x173   : > { %v1478_v42 = vadd.f32 %v4172_v37, %v1477_v16  ;;  %2188 = vrot.lane.b32.xlu2 %v2155_v36, %s3044_s19  ;;  %v2283_v36 = vmul.f32 %v4662_v9, %v4030_v22 }
 0x174   : > { %v1814_v51 = vmin.f32 %v1798_v2, 6.0  ;;  %v2096_v6 = vpop.f32.mrf.mxu2  ;;  %2837 = vmatmul.msk.f32.gmra.mxu3 %vm1405_vm10, %v2357_v43  ;;  %v2359_v43 = vadd.f32 %v2343_v3, %v2326_v58  ;;  %v2327_v17 = vadd.f32 %v2311_v31, %v2294_v60  ;;  %v2345_v58 = vmul.f32 %v4035_v48, %v4675_v35 }
 0x175   : > { %v1521_v4 = vmax.f32 %v1478_v42, 0.0  ;;  %v2097_v41 = vadd.f32 %v4172_v37, %v2096_v6  ;;  %v2281_v31 = vmul.f32 %v4662_v9, %v4658_v13 }
 0x176   : > { %1848 = vrot.lane.b32.xlu1 %v1814_v51, %s3043_s21 }
 0x177   : > { %v1537_v46 = vmin.f32 %v1521_v4, 6.0  ;;  %v2140_v54 = vmax.f32 %v2097_v41, 0.0  ;;  %v1757_v49 = vpop.f32.mrf.mxu1  ;;  %v2266_v4 = vmul.f32 %v4007_v25, %v1059_v59 }
 0x178   : > { %v1758_v44 = vadd.f32 %v4172_v37, %v1757_v49  ;;  %v2262_v49 = vmul.f32 %v4007_v25, %v4002_v33 }
 0x179   : > { %1553 = vst.msk [vmem:[%s4193_s20 + $0x10] sm:$0xff] %vm1405_vm10, %v1537_v46  ;;  %v2156_v34 = vmin.f32 %v2140_v54, 6.0  ;;  %v4269_v22 = vadd.f32 %v2283_v36, %v2266_v4  ;;  %v2344_v54 = vmul.f32 %v4035_v48, %v3714_v30 }
 0x17a   : > { %v1799_v40 = vmax.f32 %v1758_v44, 0.0  ;;  %v1480_v29 = vpop.f32.mrf.mxu0  ;;  %v2279_v44 = vmul.f32 %v4662_v9, %v4655_v5 }
 0x17b   : > { %v1481_v10 = vadd.f32 %v4172_v37, %v1480_v29  ;;  %2190 = vrot.lane.b32.xlu0 %v2156_v34, %s3044_s19  ;;  %v2360_v12 = vadd.f32 %v2344_v54, %v2327_v17  ;;  %v2312_v34 = vmul.f32 %v4025_v23, %v4674_v53 }
 0x17c   : > { %v1815_v0 = vmin.f32 %v1799_v40, 6.0  ;;  %v2099_v55 = vpop.f32.mrf.mxu2  ;;  %2838 = vmatmul.msk.f32.gmra.mxu3 %vm1405_vm10, %v2358_v8  ;;  %v2295_v45 = vadd.f32 %v2279_v44, %v2262_v49 }
 0x17d   : > { %v1522_v38 = vmax.f32 %v1481_v10, 0.0  ;;  %v2100_v56 = vadd.f32 %v4172_v37, %v2099_v55 }
 0x17e   : > { %1850 = vrot.lane.b32.xlu1 %v1815_v0, %s3043_s21  ;;  %v2328_v55 = vadd.f32 %v2312_v34, %v2295_v45  ;;  %v2265_v34 = vmul.f32 %v4007_v25, %v4127_v7 }
 0x17f   : > { %v1538_v14 = vmin.f32 %v1522_v38, 6.0  ;;  %v1760_v11 = vpop.f32.mrf.mxu1  ;;  %v2141_v63 = vmax.f32 %v2100_v56, 0.0 }
 0x180   : > { %v1761_v19 = vadd.f32 %v4172_v37, %v1760_v11 }
 0x181   : > { %1554 = vst.msk [vmem:[%s4193_s20 + $0x18] sm:$0xff] %vm1405_vm10, %v1538_v14  ;;  %v2157_v42 = vmin.f32 %v2141_v63, 6.0  ;;  %v2361_v63 = vadd.f32 %v2345_v58, %v2328_v55 }
 0x182   : > { %v1800_v2 = vmax.f32 %v1761_v19, 0.0  ;;  %v1483_v16 = vpop.f32.mrf.mxu0 }
 0x183   : > { %v1484_v18 = vadd.f32 %v4172_v37, %v1483_v16  ;;  %v2346_v16 = vmul.f32 %v4035_v48, %v4654_v32 }
 0x184   : > { %v1816_v51 = vmin.f32 %v1800_v2, 6.0  ;;  %v2102_v6 = vpop.f32.mrf.mxu2  ;;  %2839 = vmatmul.msk.f32.gmra.mxu3 %vm1405_vm10, %v2359_v43  ;;  %v2264_v43 = vmul.f32 %v4007_v25, %v4074_v52 }
 0x185   : > { %v1523_v41 = vmax.f32 %v1484_v18, 0.0  ;;  %v2103_v15 = vadd.f32 %v4172_v37, %v2102_v6  ;;  %v2362_v17 = vadd.f32 %v2346_v16, %v4158_v1 }
 0x186   : > { %1852 = vrot.lane.b32.xlu2 %v1816_v51, %s3043_s21  ;;  %2192 = vrot.lane.b32.xlu1 %v2157_v42, %s3044_s19 }
 0x187   : > { %v1539_v50 = vmin.f32 %v1523_v41, 6.0  ;;  %v1763_v57 = vpop.f32.mrf.mxu1  ;;  %v2142_v46 = vmax.f32 %v2103_v15, 0.0 }
 0x188   : > { %v1764_v8 = vadd.f32 %v4172_v37, %v1763_v57  ;;  %v2314_v57 = vmul.f32 %v4025_v23, %v4002_v33  ;;  %v2347_v33 = vmul.f32 %v4035_v48, %v4655_v5 }
 0x189   : > { %1555 = vst.msk [vmem:[%s4193_s20 + $0x20] sm:$0xff] %vm1405_vm10, %v1539_v50  ;;  %v2158_v29 = vmin.f32 %v2142_v46, 6.0  ;;  %v2297_v50 = vadd.f32 %v2281_v31, %v2264_v43 }
 0x18a   : > { %v1486_v28 = vpop.f32.mrf.mxu0  ;;  %v1801_v53 = vmax.f32 %v1764_v8, 0.0 }
 0x18b   : > { %v1487_v40 = vadd.f32 %v4172_v37, %v1486_v28  ;;  %v2330_v1 = vadd.f32 %v2314_v57, %v2297_v50 }
 0x18c   : > { %v2105_v30 = vpop.f32.mrf.mxu2  ;;  %2840 = vmatmul.msk.f32.gmra.mxu3 %vm1405_vm10, %v2360_v12  ;;  %v1817_v3 = vmin.f32 %v1801_v53, 6.0 }
 0x18d   : > { %v1524_v10 = vmax.f32 %v1487_v40, 0.0  ;;  %v2106_v0 = vadd.f32 %v4172_v37, %v2105_v30  ;;  %v2282_v40 = vmul.f32 %v4662_v9, %v3588_v27  ;;  %v2363_v53 = vadd.f32 %v2347_v33, %v2330_v1 }
 0x18e   : > { %2194 = vrot.lane.b32.xlu2 %v2158_v29, %s3044_s19 }
 0x18f   : > { %v1540_v47 = vmin.f32 %v1524_v10, 6.0  ;;  %v2143_v38 = vmax.f32 %v2106_v0, 0.0  ;;  %v1766_v56 = vpop.f32.mrf.mxu1  ;;  %v739_v10 = vadd.s32 152, %v3253_v26  ;;  %v2298_v58 = vadd.f32 %v2282_v40, %v2265_v34 }
 0x190   : > { %v1767_v11 = vadd.f32 %v4172_v37, %v1766_v56 }
 0x191   : > { %1556 = vst.msk [vmem:[%s4193_s20 + $0x28] sm:$0xff] %vm1405_vm10, %v1540_v47  ;;  %v2159_v14 = vmin.f32 %v2143_v38, 6.0  ;;  %v877_v26 = vand.u32 15, %v739_v10 }
 0x192   : > { %v1489_v39 = vpop.f32.mrf.mxu0  ;;  %v1802_v36 = vmax.f32 %v1767_v11, 0.0 }
 0x193   : > { %v1490_v19 = vadd.f32 %v4172_v37, %v1489_v39  ;;  %2196 = vrot.lane.b32.xlu0 %v2159_v14, %s3044_s19  ;;  %v2315_v14 = vmul.f32 %v4025_v23, %v4060_v21  ;;  %v2348_v21 = vmul.f32 %v4035_v48, %v4656_v20  ;;  %vm4338_vm11 = vcmp.ne.s32.totalorder %v877_v26, 15 }
 0x194   : > { %v2108_v62 = vpop.f32.mrf.mxu2  ;;  %2841 = vmatmul.msk.f32.gmra.mxu3 %vm1405_vm10, %v2361_v63  ;;  %v1818_v60 = vmin.f32 %v1802_v36, 6.0 }
 0x195   : > { %v1525_v2 = vmax.f32 %v1490_v19, 0.0  ;;  %v2109_v35 = vadd.f32 %v4172_v37, %v2108_v62  ;;  %v2331_v36 = vadd.f32 %v2315_v14, %v2298_v58 }
 0x196   : > { %1854 = vrot.lane.b32.xlu2 %v1817_v3, %s3043_s21 }
 0x197   : > { %v1541_v18 = vmin.f32 %v1525_v2, 6.0  ;;  %v2144_v59 = vmax.f32 %v2109_v35, 0.0  ;;  %v1501_v42 = vpop.f32.mrf.mxu3  ;;  %v1769_v51 = vpop.f32.mrf.mxu1 }
 0x198   : > { %v1502_v6 = vadd.f32 %v4172_v37, %v1501_v42  ;;  %v1770_v41 = vadd.f32 %v4172_v37, %v1769_v51 }
 0x199   : > { %1557 = vst.msk [vmem:[%s4193_s20 + $0x30] sm:$0xff] %vm1405_vm10, %v1541_v18  ;;  %v2160_v4 = vmin.f32 %v2144_v59, 6.0  ;;  %v1080_v18 = vsel %vm1020_vm2, %v1058_v61, 0.0  ;;  %vm1892_vm2 = vcmask 130112  }
 0x19a   : > { %v1529_v32 = vmax.f32 %v1502_v6, 0.0  ;;  %v1492_v15 = vpop.f32.mrf.mxu0  ;;  %v1803_v44 = vmax.f32 %v1770_v41, 0.0  ;;  %v2316_v41 = vmul.f32 %v4025_v23, %v4074_v52  ;;  %v2284_v52 = vmul.f32 %v4662_v9, %v4080_v24 }
 0x19b   : > { %v1493_v46 = vadd.f32 %v4172_v37, %v1492_v15  ;;  %2198 = vrot.lane.b32.xlu1 %v2160_v4, %s3044_s19  ;;  %1856 = vrot.lane.b32.xlu0 %v1818_v60, %s3043_s21  ;;  %v2364_v4 = vadd.f32 %v2348_v21, %v2331_v36 }
 0x19c   : > { %v1545_v54 = vmin.f32 %v1529_v32, 6.0  ;;  %v2111_v49 = vpop.f32.mrf.mxu2  ;;  %2842 = vmatmul.msk.f32.gmra.mxu3 %vm1405_vm10, %v2362_v17  ;;  %v1819_v55 = vmin.f32 %v1803_v44, 6.0  ;;  %v1140_v32 = vsel %vm4338_vm11, %v1080_v18, 0.0 }
 0x19d   : > { %v1526_v28 = vmax.f32 %v1493_v46, 0.0  ;;  %v2112_v12 = vadd.f32 %v4172_v37, %v2111_v49  ;;  %v2349_v49 = vmul.f32 %v4035_v48, %v4658_v13  ;;  %v2267_v44 = vmul.f32 %v4007_v25, %v1140_v32 }
 0x19e   : > { %1561 = vst.msk [vmem:[%s4193_s20 + $0x50] sm:$0xff] %vm1405_vm10, %v1545_v54  ;;  %v2332_v54 = vadd.f32 %v2316_v41, %v4269_v22  ;;  %v2317_v13 = vmul.f32 %v4025_v23, %v4127_v7 }
 0x19f   : > { %v1542_v29 = vmin.f32 %v1526_v28, 6.0  ;;  %v2145_v8 = vmax.f32 %v2112_v12, 0.0  ;;  %v1504_v30 = vpop.f32.mrf.mxu3  ;;  %v1772_v45 = vpop.f32.mrf.mxu1 }
 0x1a0   : > { %v1505_v0 = vadd.f32 %v4172_v37, %v1504_v30  ;;  %v1773_v5 = vadd.f32 %v4172_v37, %v1772_v45  ;;  %v2365_v22 = vadd.f32 %v2349_v49, %v2332_v54 }
 0x1a1   : > { %1558 = vst.msk [vmem:[%s4193_s20 + $0x38] sm:$0xff] %vm1405_vm10, %v1542_v29  ;;  %v2161_v47 = vmin.f32 %v2145_v8, 6.0  ;;  %v2300_v8 = vadd.f32 %v2284_v52, %v2267_v44 }
 0x1a2   : > { %v1530_v38 = vmax.f32 %v1505_v0, 0.0  ;;  %v1495_v56 = vpop.f32.mrf.mxu0  ;;  %v1804_v19 = vmax.f32 %v1773_v5, 0.0 }
 0x1a3   : > { %v1496_v11 = vadd.f32 %v4172_v37, %v1495_v56  ;;  %2200 = vrot.lane.b32.xlu2 %v2161_v47, %s3044_s19  ;;  %1858 = vrot.lane.b32.xlu1 %v1819_v55, %s3043_s21  ;;  %v2333_v0 = vadd.f32 %v2317_v13, %v2300_v8  ;;  %v2350_v55 = vmul.f32 %v4035_v48, %v3588_v27 }
 0x1a4   : > { %v1546_v39 = vmin.f32 %v1530_v38, 6.0  ;;  %v2114_v63 = vpop.f32.mrf.mxu2  ;;  %2843 = vmatmul.msk.f32.gmra.mxu3 %vm1405_vm10, %v2363_v53  ;;  %v1820_v42 = vmin.f32 %v1804_v19, 6.0 }
 0x1a5   : > { %v1527_v3 = vmax.f32 %v1496_v11, 0.0  ;;  %v2115_v62 = vadd.f32 %v4172_v37, %v2114_v63  ;;  %v2366_v14 = vadd.f32 %v2350_v55, %v2333_v0 }
 0x1a6   : > { %1562 = vst.msk [vmem:[%s4193_s20 + $0x58] sm:$0xff] %vm1405_vm10, %v1546_v39 }
 0x1a7   : > { %v1543_v2 = vmin.f32 %v1527_v3, 6.0  ;;  %v2146_v35 = vmax.f32 %v2115_v62, 0.0  ;;  %v1507_v16 = vpop.f32.mrf.mxu3  ;;  %v1775_v43 = vpop.f32.mrf.mxu1 }
 0x1a8   : > { %v1508_v59 = vadd.f32 %v4172_v37, %v1507_v16  ;;  %v1776_v20 = vadd.f32 %v4172_v37, %v1775_v43 }
 0x1a9   : > { %1559 = vst.msk [vmem:[%s4193_s20 + $0x40] sm:$0xff] %vm1405_vm10, %v1543_v2  ;;  %v2162_v51 = vmin.f32 %v2146_v35, 6.0 }
 0x1aa   : > { %v1531_v6 = vmax.f32 %v1508_v59, 0.0  ;;  %v1498_v60 = vpop.f32.mrf.mxu0  ;;  %v1805_v50 = vmax.f32 %v1776_v20, 0.0 }
 0x1ab   : > { %v1499_v61 = vadd.f32 %v4172_v37, %v1498_v60  ;;  %1860 = vrot.lane.b32.xlu2 %v1820_v42, %s3043_s21  ;;  %2202 = vrot.lane.b32.xlu0 %v2162_v51, %s3044_s19 }
 0x1ac   : > { %v1547_v15 = vmin.f32 %v1531_v6, 6.0  ;;  %v2117_v17 = vpop.f32.mrf.mxu2  ;;  %2844 = vmatmul.msk.f32.gmra.mxu3 %vm1405_vm10, %v2364_v4  ;;  %v1821_v40 = vmin.f32 %v1805_v50, 6.0 }
 0x1ad   : > { %v1528_v57 = vmax.f32 %v1499_v61, 0.0  ;;  %v2118_v46 = vadd.f32 %v4172_v37, %v2117_v17 }
 0x1ae   : > { %1563 = vst.msk [vmem:[%s4193_s20 + $0x60] sm:$0xff] %vm1405_vm10, %v1547_v15 }
 0x1af   : > { %v1544_v28 = vmin.f32 %v1528_v57, 6.0  ;;  %v2147_v12 = vmax.f32 %v2118_v46, 0.0  ;;  %v1510_v1 = vpop.f32.mrf.mxu3  ;;  %v1778_v33 = vpop.f32.mrf.mxu1 }
 0x1b0   : > { %v1511_v34 = vadd.f32 %v4172_v37, %v1510_v1  ;;  %v1779_v24 = vadd.f32 %v4172_v37, %v1778_v33 }
 0x1b1   : > { %1560 = vst.msk [vmem:[%s4193_s20 + $0x48] sm:$0xff] %vm1405_vm10, %v1544_v28  ;;  %v2163_v9 = vmin.f32 %v2147_v12, 6.0 }
 0x1b2   : > { %v1532_v29 = vmax.f32 %v1511_v34, 0.0  ;;  %v1806_v45 = vmax.f32 %v1779_v24, 0.0 }
 0x1b3   : > { %2204 = vrot.lane.b32.xlu1 %v2163_v9, %s3044_s19  ;;  %1862 = vrot.lane.b32.xlu0 %v1821_v40, %s3043_s21 }
 0x1b4   : > { %v1548_v25 = vmin.f32 %v1532_v29, 6.0  ;;  %v2120_v30 = vpop.f32.mrf.mxu2  ;;  %2845 = vmatmul.msk.f32.gmra.mxu3 %vm1405_vm10, %v2365_v22  ;;  %v1822_v38 = vmin.f32 %v1806_v45, 6.0 }
 0x1b5   : > { %v2121_v10 = vadd.f32 %v4172_v37, %v2120_v30 }
 0x1b6   : > { %1564 = vst.msk [vmem:[%s4193_s20 + $0x68] sm:$0xff] %vm1405_vm10, %v1548_v25 }
 0x1b7   : > { %v2148_v47 = vmax.f32 %v2121_v10, 0.0  ;;  %v1513_v23 = vpop.f32.mrf.mxu3  ;;  %v1781_v7 = vpop.f32.mrf.mxu1 }
 0x1b8   : > { %v1514_v5 = vadd.f32 %v4172_v37, %v1513_v23  ;;  %v1782_v53 = vadd.f32 %v4172_v37, %v1781_v7 }
 0x1b9   : > { %v2164_v56 = vmin.f32 %v2148_v47, 6.0 }
 0x1ba   : > { %v1533_v58 = vmax.f32 %v1514_v5, 0.0  ;;  %v1807_v27 = vmax.f32 %v1782_v53, 0.0 }
 0x1bb   : > { %2206 = vrot.lane.b32.xlu2 %v2164_v56, %s3044_s19  ;;  %1864 = vrot.lane.b32.xlu1 %v1822_v38, %s3043_s21 }
 0x1bc   : > { %v1549_v11 = vmin.f32 %v1533_v58, 6.0  ;;  %v2123_v26 = vpop.f32.mrf.mxu2  ;;  %2846 = vmatmul.msk.f32.gmra.mxu3 %vm1405_vm10, %v2366_v14  ;;  %v1823_v62 = vmin.f32 %v1807_v27, 6.0 }
 0x1bd   : > { %v2124_v48 = vadd.f32 %v4172_v37, %v2123_v26 }
 0x1be   : > { %1565 = vst.msk [vmem:[%s4193_s20 + $0x70] sm:$0xff] %vm1405_vm10, %v1549_v11 }
 0x1bf   : > { %v2149_v39 = vmax.f32 %v2124_v48, 0.0  ;;  %v1516_v63 = vpop.f32.mrf.mxu3  ;;  %v1784_v19 = vpop.f32.mrf.mxu1 }
 0x1c0   : > { %v1517_v3 = vadd.f32 %v4172_v37, %v1516_v63  ;;  %v1785_v21 = vadd.f32 %v4172_v37, %v1784_v19 }
 0x1c1   : > { %v2165_v36 = vmin.f32 %v2149_v39, 6.0 }
 0x1c2   : > { %v1534_v2 = vmax.f32 %v1517_v3, 0.0  ;;  %v1808_v43 = vmax.f32 %v1785_v21, 0.0 }
 0x1c3   : > { %1866 = vrot.lane.b32.xlu2 %v1823_v62, %s3043_s21  ;;  %2208 = vrot.lane.b32.xlu0 %v2165_v36, %s3044_s19 }
 0x1c4   : > { %v1550_v35 = vmin.f32 %v1534_v2, 6.0  ;;  %v2126_v16 = vpop.f32.mrf.mxu2  ;;  %v1824_v20 = vmin.f32 %v1808_v43, 6.0 }
 0x1c5   : > { %v2127_v31 = vadd.f32 %v4172_v37, %v2126_v16 }
 0x1c6   : > { %1566 = vst.msk [vmem:[%s4193_s20 + $0x78] sm:$0xff] %vm1405_vm10, %v1550_v35  ;;  %vm2234_vm10 = vcmask 195712  }
 0x1c7   : > { %v2150_v18 = vmax.f32 %v2127_v31, 0.0  ;;  %v1787_v59 = vpop.f32.mrf.mxu1  ;;  %v2432_v42 = vpop.f32.mrf.mxu3 }
 0x1c8   : > { %v2433_v51 = vadd.f32 %v4172_v37, %v2432_v42  ;;  %v1788_v60 = vadd.f32 %v4172_v37, %v1787_v59 }
 0x1c9   : > { %v2166_v6 = vmin.f32 %v2150_v18, 6.0 }
 0x1ca   : > { %v2480_v4 = vmax.f32 %v2433_v51, 0.0  ;;  %v1809_v61 = vmax.f32 %v1788_v60, 0.0 }
 0x1cb   : > { %2210 = vrot.lane.b32.xlu1 %v2166_v6, %s3044_s19  ;;  %1868 = vrot.lane.b32.xlu0 %v1824_v20, %s3043_s21 }
 0x1cc   : > { %v2496_v41 = vmin.f32 %v2480_v4, 6.0  ;;  %v2129_v32 = vpop.f32.mrf.mxu2  ;;  %v1825_v52 = vmin.f32 %v1809_v61, 6.0 }
 0x1cd   : > { %v2130_v15 = vadd.f32 %v4172_v37, %v2129_v32  ;;  %v2189_v34 = vpop.permute.xlu2 %2188 }
 0x1ce   : > { %2528 = vrot.lane.b32.xlu2 %v2496_v41, %s3045_s27 }
 0x1cf   : > { %v2435_v17 = vpop.f32.mrf.mxu3  ;;  %v2151_v50 = vmax.f32 %v2130_v15, 0.0  ;;  %v1790_v57 = vpop.f32.mrf.mxu1 }
 0x1d0   : > { %v2436_v46 = vadd.f32 %v4172_v37, %v2435_v17  ;;  %v1791_v44 = vadd.f32 %v4172_v37, %v1790_v57 }
 0x1d1   : > { %v2167_v49 = vmin.f32 %v2151_v50, 6.0 }
 0x1d2   : > { %v2481_v54 = vmax.f32 %v2436_v46, 0.0  ;;  %v1810_v40 = vmax.f32 %v1791_v44, 0.0 }
 0x1d3   : > { %1870 = vrot.lane.b32.xlu1 %v1825_v52, %s3043_s21 }
 0x1d4   : > { %v2497_v28 = vmin.f32 %v2481_v54, 6.0  ;;  %v2132_v12 = vpop.f32.mrf.mxu2  ;;  %v1826_v13 = vmin.f32 %v1810_v40, 6.0 }
 0x1d5   : > { %v2133_v1 = vadd.f32 %v4172_v37, %v2132_v12 }
 0x1d6   : > { %2212 = vrot.lane.b32.xlu2 %v2167_v49, %s3044_s19  ;;  %2530 = vrot.lane.b32.xlu0 %v2497_v28, %s3045_s27 }
 0x1d7   : > { %v2438_v33 = vpop.f32.mrf.mxu3  ;;  %v2152_v29 = vmax.f32 %v2133_v1, 0.0  ;;  %v1793_v22 = vpop.f32.mrf.mxu1 }
 0x1d8   : > { %v2439_v9 = vadd.f32 %v4172_v37, %v2438_v33  ;;  %v1845_v24 = vpop.permute.xlu0 %1844  ;;  %v1794_v10 = vadd.f32 %v4172_v37, %v1793_v22 }
 0x1d9   : > { %1893 = vst.msk [vmem:[%s4193_s20] sm:$0xff] %vm1892_vm2, %v1845_v24  ;;  %v2168_v45 = vmin.f32 %v2152_v29, 6.0 }
 0x1da   : > { %v2482_v8 = vmax.f32 %v2439_v9, 0.0  ;;  %v1811_v56 = vmax.f32 %v1794_v10, 0.0 }
 0x1dc   : > { %v2498_v25 = vmin.f32 %v2482_v8, 6.0  ;;  %v2135_v30 = vpop.f32.mrf.mxu2  ;;  %v1827_v11 = vmin.f32 %v1811_v56, 6.0 }
 0x1dd   : > { %v2136_v0 = vadd.f32 %v4172_v37, %v2135_v30  ;;  %v2187_v55 = vpop.permute.xlu1 %2186 }
 0x1de   : > { %2235 = vst.msk [vmem:[%s4193_s20] sm:$0xff] %vm2234_vm10, %v2187_v55  ;;  %1872 = vrot.lane.b32.xlu2 %v1826_v13, %s3043_s21  ;;  %2532 = vrot.lane.b32.xlu1 %v2498_v25, %s3045_s27 }
 0x1df   : > { %2214 = vrot.lane.b32.xlu0 %v2168_v45, %s3044_s19  ;;  %v2441_v47 = vpop.f32.mrf.mxu3  ;;  %v2153_v23 = vmax.f32 %v2136_v0, 0.0 }
 0x1e0   : > { %v2442_v7 = vadd.f32 %v4172_v37, %v2441_v47  ;;  %v1853_v5 = vpop.permute.xlu2 %1852  ;;  %v1847_v38 = vpop.permute.xlu0 %1846 }
 0x1e1   : > { %1897 = vst.msk [vmem:[%s4193_s20 + $0x20] sm:$0xff] %vm1892_vm2, %v1853_v5  ;;  %v2169_v58 = vmin.f32 %v2153_v23, 6.0 }
 0x1e2   : > { %v2483_v53 = vmax.f32 %v2442_v7, 0.0  ;;  %1894 = vst.msk [vmem:[%s4193_s20 + $0x8] sm:$0xff] %vm1892_vm2, %v1847_v38 }
 0x1e3   : > { %2236 = vst.msk [vmem:[%s4193_s20 + $0x8] sm:$0xff] %vm2234_vm10, %v2189_v34 }
 0x1e4   : > { %v2499_v14 = vmin.f32 %v2483_v53, 6.0 }
 0x1e6   : > { %2534 = vrot.lane.b32.xlu2 %v2499_v14, %s3045_s27  ;;  %2216 = vrot.lane.b32.xlu1 %v2169_v58, %s3044_s19 }
 0x1e7   : > { %1874 = vrot.lane.b32.xlu0 %v1827_v11, %s3043_s21  ;;  %v2444_v26 = vpop.f32.mrf.mxu3 }
 0x1e8   : > { %v2445_v27 = vadd.f32 %v4172_v37, %v2444_v26  ;;  %v2195_v48 = vpop.permute.xlu2 %2194  ;;  %v1849_v39 = vpop.permute.xlu1 %1848 }
 0x1e9   : > { %2239 = vst.msk [vmem:[%s4193_s20 + $0x20] sm:$0xff] %vm2234_vm10, %v2195_v48 }
 0x1ea   : > { %v2484_v63 = vmax.f32 %v2445_v27, 0.0  ;;  %1895 = vst.msk [vmem:[%s4193_s20 + $0x10] sm:$0xff] %vm1892_vm2, %v1849_v39 }
 0x1ec   : > { %v2500_v19 = vmin.f32 %v2484_v63, 6.0 }
 0x1ed   : > { %v2191_v3 = vpop.permute.xlu0 %2190 }
 0x1ee   : > { %2237 = vst.msk [vmem:[%s4193_s20 + $0x10] sm:$0xff] %vm2234_vm10, %v2191_v3 }
 0x1ef   : > { %2536 = vrot.lane.b32.xlu0 %v2500_v19, %s3045_s27  ;;  %v2447_v62 = vpop.f32.mrf.mxu3 }
 0x1f0   : > { %v2448_v36 = vadd.f32 %v4172_v37, %v2447_v62  ;;  %v1855_v21 = vpop.permute.xlu2 %1854  ;;  %v1851_v2 = vpop.permute.xlu1 %1850 }
 0x1f1   : > { %1898 = vst.msk [vmem:[%s4193_s20 + $0x28] sm:$0xff] %vm1892_vm2, %v1855_v21 }
 0x1f2   : > { %v2485_v35 = vmax.f32 %v2448_v36, 0.0  ;;  %1896 = vst.msk [vmem:[%s4193_s20 + $0x18] sm:$0xff] %vm1892_vm2, %v1851_v2 }
 0x1f4   : > { %v2501_v16 = vmin.f32 %v2485_v35, 6.0 }
 0x1f6   : > { %2538 = vrot.lane.b32.xlu1 %v2501_v16, %s3045_s27 }
 0x1f7   : > { %v2450_v43 = vpop.f32.mrf.mxu3 }
 0x1f8   : > { %v2451_v31 = vadd.f32 %v4172_v37, %v2450_v43  ;;  %v2193_v18 = vpop.permute.xlu1 %2192 }
 0x1f9   : > { %2238 = vst.msk [vmem:[%s4193_s20 + $0x18] sm:$0xff] %vm2234_vm10, %v2193_v18 }
 0x1fa   : > { %v2486_v59 = vmax.f32 %v2451_v31, 0.0 }
 0x1fc   : > { %v2502_v42 = vmin.f32 %v2486_v59, 6.0 }
 0x1fd   : > { %v2201_v51 = vpop.permute.xlu2 %2200 }
 0x1fe   : > { %2540 = vrot.lane.b32.xlu2 %v2502_v42, %s3045_s27 }
 0x1ff   : > { %v2453_v20 = vpop.f32.mrf.mxu3 }
 0x200   : > { %v2454_v6 = vadd.f32 %v4172_v37, %v2453_v20 }
 0x202   : > { %v2487_v60 = vmax.f32 %v2454_v6, 0.0 }
 0x204   : > { %v2503_v4 = vmin.f32 %v2487_v60, 6.0 }
 0x205   : > { %v1861_v41 = vpop.permute.xlu2 %1860  ;;  %v2197_v32 = vpop.permute.xlu0 %2196 }
 0x206   : > { %1901 = vst.msk [vmem:[%s4193_s20 + $0x40] sm:$0xff] %vm1892_vm2, %v1861_v41  ;;  %2542 = vrot.lane.b32.xlu0 %v2503_v4, %s3045_s27 }
 0x207   : > { %2240 = vst.msk [vmem:[%s4193_s20 + $0x28] sm:$0xff] %vm2234_vm10, %v2197_v32  ;;  %v2456_v61 = vpop.f32.mrf.mxu3 }
 0x208   : > { %v2457_v15 = vadd.f32 %v4172_v37, %v2456_v61 }
 0x20a   : > { %v2488_v17 = vmax.f32 %v2457_v15, 0.0 }
 0x20c   : > { %v2504_v50 = vmin.f32 %v2488_v17, 6.0 }
 0x20d   : > { %v2199_v57 = vpop.permute.xlu1 %2198  ;;  %v1857_v46 = vpop.permute.xlu0 %1856 }
 0x20e   : > { %1899 = vst.msk [vmem:[%s4193_s20 + $0x30] sm:$0xff] %vm1892_vm2, %v1857_v46  ;;  %2544 = vrot.lane.b32.xlu1 %v2504_v50, %s3045_s27 }
 0x20f   : > { %2241 = vst.msk [vmem:[%s4193_s20 + $0x30] sm:$0xff] %vm2234_vm10, %v2199_v57  ;;  %v2459_v52 = vpop.f32.mrf.mxu3 }
 0x210   : > { %v2460_v54 = vadd.f32 %v4172_v37, %v2459_v52 }
 0x212   : > { %v2489_v49 = vmax.f32 %v2460_v54, 0.0 }
 0x214   : > { %v2505_v44 = vmin.f32 %v2489_v49, 6.0 }
 0x215   : > { %v2207_v28 = vpop.permute.xlu2 %2206  ;;  %v1859_v12 = vpop.permute.xlu1 %1858 }
 0x216   : > { %1900 = vst.msk [vmem:[%s4193_s20 + $0x38] sm:$0xff] %vm1892_vm2, %v1859_v12  ;;  %2546 = vrot.lane.b32.xlu2 %v2505_v44, %s3045_s27 }
 0x217   : > { %2242 = vst.msk [vmem:[%s4193_s20 + $0x38] sm:$0xff] %vm2234_vm10, %v2201_v51  ;;  %v2462_v1 = vpop.f32.mrf.mxu3 }
 0x218   : > { %v2463_v33 = vadd.f32 %v4172_v37, %v2462_v1 }
 0x21a   : > { %v2490_v34 = vmax.f32 %v2463_v33, 0.0 }
 0x21c   : > { %v2506_v40 = vmin.f32 %v2490_v34, 6.0 }
 0x21d   : > { %v1867_v9 = vpop.permute.xlu2 %1866  ;;  %v2203_v24 = vpop.permute.xlu0 %2202 }
 0x21e   : > { %1904 = vst.msk [vmem:[%s4193_s20 + $0x58] sm:$0xff] %vm1892_vm2, %v1867_v9  ;;  %2548 = vrot.lane.b32.xlu0 %v2506_v40, %s3045_s27 }
 0x21f   : > { %2243 = vst.msk [vmem:[%s4193_s20 + $0x40] sm:$0xff] %vm2234_vm10, %v2203_v24  ;;  %v2465_v29 = vpop.f32.mrf.mxu3 }
 0x220   : > { %v2466_v22 = vadd.f32 %v4172_v37, %v2465_v29 }
 0x222   : > { %v2491_v8 = vmax.f32 %v2466_v22, 0.0 }
 0x224   : > { %v2507_v13 = vmin.f32 %v2491_v8, 6.0 }
 0x225   : > { %v2205_v25 = vpop.permute.xlu1 %2204  ;;  %v1863_v30 = vpop.permute.xlu0 %1862 }
 0x226   : > { %1902 = vst.msk [vmem:[%s4193_s20 + $0x48] sm:$0xff] %vm1892_vm2, %v1863_v30  ;;  %2550 = vrot.lane.b32.xlu1 %v2507_v13, %s3045_s27 }
 0x227   : > { %2244 = vst.msk [vmem:[%s4193_s20 + $0x48] sm:$0xff] %vm2234_vm10, %v2205_v25  ;;  %v2468_v45 = vpop.f32.mrf.mxu3 }
 0x228   : > { %v2469_v10 = vadd.f32 %v4172_v37, %v2468_v45  ;;  %v2529_v0 = vpop.permute.xlu2 %2528 }
 0x229   : > { %2577 = vst.msk [vmem:[%s4193_s20] sm:$0xff] %vm2576_vm12, %v2529_v0 }
 0x22a   : > { %v2492_v55 = vmax.f32 %v2469_v10, 0.0 }
 0x22c   : > { %v2508_v47 = vmin.f32 %v2492_v55, 6.0 }
 0x22d   : > { %v1865_v23 = vpop.permute.xlu1 %1864 }
 0x22e   : > { %1903 = vst.msk [vmem:[%s4193_s20 + $0x50] sm:$0xff] %vm1892_vm2, %v1865_v23  ;;  %2552 = vrot.lane.b32.xlu2 %v2508_v47, %s3045_s27 }
 0x22f   : > { %2245 = vst.msk [vmem:[%s4193_s20 + $0x50] sm:$0xff] %vm2234_vm10, %v2207_v28  ;;  %v2471_v7 = vpop.f32.mrf.mxu3 }
 0x230   : > { %v2472_v5 = vadd.f32 %v4172_v37, %v2471_v7  ;;  %v2213_v38 = vpop.permute.xlu2 %2212 }
 0x232   : > { %v2493_v56 = vmax.f32 %v2472_v5, 0.0 }
 0x234   : > { %v2509_v53 = vmin.f32 %v2493_v56, 6.0 }
 0x235   : > { %v2209_v58 = vpop.permute.xlu0 %2208 }
 0x236   : > { %2246 = vst.msk [vmem:[%s4193_s20 + $0x58] sm:$0xff] %vm2234_vm10, %v2209_v58  ;;  %2554 = vrot.lane.b32.xlu0 %v2509_v53, %s3045_s27 }
 0x237   : > { %v2474_v14 = vpop.f32.mrf.mxu3 }
 0x238   : > { %v2475_v11 = vadd.f32 %v4172_v37, %v2474_v14  ;;  %v1873_v26 = vpop.permute.xlu2 %1872 }
 0x239   : > { %1907 = vst.msk [vmem:[%s4193_s20 + $0x70] sm:$0xff] %vm1892_vm2, %v1873_v26 }
 0x23a   : > { %v2494_v27 = vmax.f32 %v2475_v11, 0.0 }
 0x23c   : > { %v2510_v48 = vmin.f32 %v2494_v27, 6.0 }
 0x23d   : > { %v2211_v39 = vpop.permute.xlu1 %2210  ;;  %v1869_v63 = vpop.permute.xlu0 %1868 }
 0x23e   : > { %1905 = vst.msk [vmem:[%s4193_s20 + $0x60] sm:$0xff] %vm1892_vm2, %v1869_v63  ;;  %2556 = vrot.lane.b32.xlu1 %v2510_v48, %s3045_s27 }
 0x23f   : > { %2247 = vst.msk [vmem:[%s4193_s20 + $0x60] sm:$0xff] %vm2234_vm10, %v2211_v39  ;;  %v2477_v19 = vpop.f32.mrf.mxu3 }
 0x240   : > { %v2478_v3 = vadd.f32 %v4172_v37, %v2477_v19  ;;  %v2535_v62 = vpop.permute.xlu2 %2534 }
 0x241   : > { %2580 = vst.msk [vmem:[%s4193_s20 + $0x18] sm:$0xff] %vm2576_vm12, %v2535_v62 }
 0x242   : > { %v2495_v36 = vmax.f32 %v2478_v3, 0.0 }
 0x244   : > { %v2511_v21 = vmin.f32 %v2495_v36, 6.0 }
 0x245   : > { %v1871_v2 = vpop.permute.xlu1 %1870 }
 0x246   : > { %1906 = vst.msk [vmem:[%s4193_s20 + $0x68] sm:$0xff] %vm1892_vm2, %v1871_v2  ;;  %2558 = vrot.lane.b32.xlu2 %v2511_v21, %s3045_s27 }
 0x247   : > { %2248 = vst.msk [vmem:[%s4193_s20 + $0x68] sm:$0xff] %vm2234_vm10, %v2213_v38 }
 0x248   : > { %v2531_v35 = vpop.permute.xlu0 %2530 }
 0x249   : > { %2578 = vst.msk [vmem:[%s4193_s20 + $0x8] sm:$0xff] %vm2576_vm12, %v2531_v35 }
 0x250   : > { %v2533_v37 = vpop.permute.xlu1 %2532 }
 0x251   : > { %2579 = vst.msk [vmem:[%s4193_s20 + $0x10] sm:$0xff] %vm2576_vm12, %v2533_v37  ;;  %v2215_v16 = vpop.permute.xlu0 %2214 }
 0x252   : > { %2249 = vst.msk [vmem:[%s4193_s20 + $0x70] sm:$0xff] %vm2234_vm10, %v2215_v16 }
 0x258   : > { %v2541_v43 = vpop.permute.xlu2 %2540  ;;  %v2217_v31 = vpop.permute.xlu1 %2216 }
 0x259   : > { %2583 = vst.msk [vmem:[%s4193_s20 + $0x30] sm:$0xff] %vm2576_vm12, %v2541_v43  ;;  %v1875_v18 = vpop.permute.xlu0 %1874 }
 0x25a   : > { %1908 = vst.msk [vmem:[%s4193_s20 + $0x78] sm:$0xff] %vm1892_vm2, %v1875_v18 }
 0x25b   : > { %2250 = vst.msk [vmem:[%s4193_s20 + $0x78] sm:$0xff] %vm2234_vm10, %v2217_v31 }
 0x261   : > { %v2537_v59 = vpop.permute.xlu0 %2536 }
 0x262   : > { %2581 = vst.msk [vmem:[%s4193_s20 + $0x20] sm:$0xff] %vm2576_vm12, %v2537_v59 }
 0x268   : > { %v2539_v42 = vpop.permute.xlu1 %2538 }
 0x269   : > { %2582 = vst.msk [vmem:[%s4193_s20 + $0x28] sm:$0xff] %vm2576_vm12, %v2539_v42 }
 0x270   : > { %v2547_v51 = vpop.permute.xlu2 %2546 }
 0x271   : > { %2586 = vst.msk [vmem:[%s4193_s20 + $0x48] sm:$0xff] %vm2576_vm12, %v2547_v51 }
 0x278   : > { %v2543_v20 = vpop.permute.xlu0 %2542 }
 0x279   : > { %2584 = vst.msk [vmem:[%s4193_s20 + $0x38] sm:$0xff] %vm2576_vm12, %v2543_v20 }
 0x280   : > { %v2545_v6 = vpop.permute.xlu1 %2544 }
 0x281   : > { %2585 = vst.msk [vmem:[%s4193_s20 + $0x40] sm:$0xff] %vm2576_vm12, %v2545_v6 }
 0x288   : > { %v2553_v60 = vpop.permute.xlu2 %2552 }
 0x289   : > { %2589 = vst.msk [vmem:[%s4193_s20 + $0x60] sm:$0xff] %vm2576_vm12, %v2553_v60 }
 0x290   : > { %v2549_v4 = vpop.permute.xlu0 %2548 }
 0x291   : > { %2587 = vst.msk [vmem:[%s4193_s20 + $0x50] sm:$0xff] %vm2576_vm12, %v2549_v4 }
 0x298   : > { %v2551_v41 = vpop.permute.xlu1 %2550 }
 0x299   : > { %2588 = vst.msk [vmem:[%s4193_s20 + $0x58] sm:$0xff] %vm2576_vm12, %v2551_v41 }
 0x2a0   : > { %v2559_v32 = vpop.permute.xlu2 %2558 }
 0x2a1   : > { %2592 = vst.msk [vmem:[%s4193_s20 + $0x78] sm:$0xff] %vm2576_vm12, %v2559_v32 }
 0x2a8   : > { %v2555_v61 = vpop.permute.xlu0 %2554 }
 0x2a9   : > { %2590 = vst.msk [vmem:[%s4193_s20 + $0x68] sm:$0xff] %vm2576_vm12, %v2555_v61 }
 0x2b0   : > { %v2557_v15 = vpop.permute.xlu1 %2556 }
 0x2b1   : > { %2591 = vst.msk [vmem:[%s4193_s20 + $0x70] sm:$0xff] %vm2576_vm12, %v2557_v15 }
 0x2b2 PF: > { %s21_s12 = sadd.s32 1, %s3039_s12   ;;  %s4678_s23 = sld [smem:[#allocation8_spill]] }
 0x2b3   : > { %p18_p8 = scmp.ge.s32.totalorder %s21_s12, 6   ;;  %s4679_s30 = sld [smem:[#allocation5_spill]] }
 0x2b4   : > { %s4680_s10 = sld [smem:[#allocation6_spill]]  ;;  %s4682_s27 = smov %s3015_s28 }
 0x2b5   : > { %s4681_s24 = sld [smem:[#allocation7_spill]]  ;;  %s4683_s28 = smov %s3019_s29 }
 0x2b6   : > { %s4685_s9 = smov %s3035_s11 }
 0x2b7   :  { %20 = sbr.rel (!%p18_p8) target bundleno = 7 (0x7), region = 98 }
 0x2b8   : > { %s4684_s29 = smov %s4678_s23 }
 0x2bb   : > { %s4686_s11 = smov %s4681_s24 }
 0x2bc   :  { %2623 = vsyncpa [#allocation3], 1 }
 0x2bd   :  { %2625 = vsyncpa [#allocation3 + $0x1], 1 }

</bundles_post_ra>
